<compile_context>
chip_gen: v6e
topology: v6e:2x2x1
jax: 0.10.0
libtpu: 0.0.40
codegen_flags: <defaults>
</compile_context>

<pallas_src>
import functools

import jax
import jax.numpy as jnp
from jax.experimental import pallas as pl
from jax.experimental.pallas import tpu as pltpu


# --------------------------------------------------------------------------- #
# Helpers
# --------------------------------------------------------------------------- #
def _round_up(x, m):
    return (x + m - 1) // m * m


def _pad_gate_cols(w_t, H, Hp):
    """w_t: (in_dim, 4H), PyTorch gate order (i,f,g,o) along columns.
    Returns (in_dim, 4*Hp) with each gate block zero-padded from H to Hp cols."""
    in_dim = w_t.shape[0]
    w4 = w_t.reshape(in_dim, 4, H)
    w4p = jnp.pad(w4, ((0, 0), (0, 0), (0, Hp - H)))
    return w4p.reshape(in_dim, 4 * Hp)


def _clamp_vmem(est_bytes):
    # Derived from block shapes; floor well under every generation's default,
    # soft-cap so huge configs surface a clear "shrink Tc / tile W_hh" signal
    # (v7x has only 64 MiB/TC of physical VMEM).
    return int(min(max(int(est_bytes * 1.3) + (2 << 20), 32 << 20), 128 << 20))


# --------------------------------------------------------------------------- #
# LM-head matmul + bias kernel:  (M, K) @ (K, Np) + (1, Np)
# Weight/bias are pre-padded once in prepare_params (no per-forward weight pad).
# Grid order = (vocab tile, row tile) so the (K, tn) weight block is the
# slow-changing axis and stays resident in VMEM across all row tiles.
# --------------------------------------------------------------------------- #
def _matmul_bias_kernel(x_ref, w_ref, b_ref, o_ref):
    o_ref[...] = (jnp.dot(x_ref[...], w_ref[...],
                          preferred_element_type=jnp.float32)
                  + b_ref[...]).astype(o_ref.dtype)


def matmul_bias(x, w_p, b_p, n_out, *, tn, tm=512):
    """x: (M, K) f32; w_p: (K, Np) pre-transposed & padded (Np % tn == 0);
    b_p: (1, Np).  Returns (M, n_out)."""
    M, K = x.shape
    Np = w_p.shape[1]
    tm = min(tm, _round_up(M, 8))
    Mp = _round_up(M, tm)
    x_p = jnp.pad(x, ((0, Mp - M), (0, 0)))

    est = 4 * (2 * tm * K + 2 * K * tn + 2 * 8 * tn + 2 * tm * tn)
    out = pl.pallas_call(
        _matmul_bias_kernel,
        out_shape=jax.ShapeDtypeStruct((Mp, Np), jnp.float32),
        grid=(Np // tn, Mp // tm),                 # weight tile outer, rows inner
        in_specs=[
            pl.BlockSpec((tm, K), lambda j, i: (i, 0)),
            pl.BlockSpec((K, tn), lambda j, i: (0, j)),   # resident across i
            pl.BlockSpec((1, tn), lambda j, i: (0, j)),
        ],
        out_specs=pl.BlockSpec((tm, tn), lambda j, i: (i, j)),
        compiler_params=pltpu.CompilerParams(
            dimension_semantics=("parallel", "arbitrary"),
            vmem_limit_bytes=_clamp_vmem(est)),
    )(x_p, w_p, b_p)
    return out[:M, :n_out]


# --------------------------------------------------------------------------- #
# Recurrent LSTM kernel (per layer, fused input projection).
# Grid = (batch tiles ["parallel", shards across v7x's 2 TCs], time chunks
# ["arbitrary", resident h/c carries]).  Per chunk: one big MXU matmul computes
# the input gates for all Tc timesteps into a VMEM scratch, then a fori_loop
# runs the serial recurrence; only h @ W_hh^T is on the serial path.
# Gate order is PyTorch's (i, f, g, o); gate width is the padded Hp so every
# gate slice is lane-tile aligned (pad lanes stay exactly zero).
# --------------------------------------------------------------------------- #
def _lstm_recurrent_kernel(T, Tc, need_mask,
                           x_ref, wih_ref, b_ref, whh_ref, h0_ref, c0_ref,
                           out_ref, h_ref, c_ref, gx_ref):
    t_chunk = pl.program_id(1)

    @pl.when(t_chunk == 0)
    def _():
        h_ref[...] = h0_ref[...]
        c_ref[...] = c0_ref[...]

    Bt, Hp = h_ref.shape
    in_dim = x_ref.shape[-1]

    # Fused input projection for the whole chunk (Tc*Bt rows, one MXU matmul).
    # Bt == 8 (one full sublane tile), so folding (Tc, Bt) -> Tc*Bt is layout-clean.
    x2d = x_ref[...].reshape(Tc * Bt, in_dim)
    gx_ref[...] = (jnp.dot(x2d, wih_ref[...],
                           preferred_element_type=jnp.float32)
                   + b_ref[...])

    def step(i, carry):
        h_cur, c_cur = carry
        row0 = pl.multiple_of(i * Bt, 8)
        # W_hh is read from its VMEM ref each step (never hoisted as a value),
        # keeping vreg pressure low.
        gates = (gx_ref[pl.ds(row0, Bt), :]
                 + jnp.dot(h_cur, whh_ref[...],
                           preferred_element_type=jnp.float32))
        i_g = jax.nn.sigmoid(gates[:, 0 * Hp:1 * Hp])
        f_g = jax.nn.sigmoid(gates[:, 1 * Hp:2 * Hp])
        g_g = jnp.tanh(gates[:, 2 * Hp:3 * Hp])
        o_g = jax.nn.sigmoid(gates[:, 3 * Hp:4 * Hp])
        c_new = f_g * c_cur + i_g * g_g
        h_new = o_g * jnp.tanh(c_new)
        if need_mask:
            # Padded timesteps (beyond the true sequence length) never touch
            # the carries; their outputs are sliced off by the wrapper.
            valid = (t_chunk * Tc + i) < T
            h_new = jnp.where(valid, h_new, h_cur)
            c_new = jnp.where(valid, c_new, c_cur)
        out_ref[i] = h_new
        return (h_new, c_new)

    h_fin, c_fin = jax.lax.fori_loop(0, Tc, step, (h_ref[...], c_ref[...]),
                                     unroll=min(Tc, 8))
    h_ref[...] = h_fin
    c_ref[...] = c_fin


def lstm_layer(x, w_ih_t, bias, w_hh_t, h0, c0, *, Tc, T):
    """x: (Tp, Bp, in_dim); w_ih_t: (in_dim, 4Hp); bias: (1, 4Hp);
    w_hh_t: (Hp, 4Hp); h0/c0: (Bp, Hp).
    Returns (out (Tp, Bp, Hp), h_T (Bp, Hp), c_T (Bp, Hp))."""
    Tp, Bp, in_dim = x.shape
    G = w_hh_t.shape[1]
    Hp = G // 4
    Bt = 8                                   # batch tile = one sublane tile
    need_mask = (Tp != T)

    kernel = functools.partial(_lstm_recurrent_kernel, T, Tc, need_mask)

    f = 4  # f32 bytes
    est = (2 * Tc * Bt * in_dim * f          # x chunk (double-buffered)
           + 2 * in_dim * G * f              # W_ih
           + 2 * 8 * G * f                   # bias (sublane-padded)
           + 2 * Hp * G * f                  # W_hh
           + 8 * Bt * Hp * f                 # h0/c0 in + h/c carry out
           + 2 * Tc * Bt * Hp * f            # out chunk
           + Tc * Bt * G * f)                # gx scratch

    out_shapes = (
        jax.ShapeDtypeStruct((Tp, Bp, Hp), jnp.float32),
        jax.ShapeDtypeStruct((Bp, Hp), jnp.float32),
        jax.ShapeDtypeStruct((Bp, Hp), jnp.float32),
    )
    return pl.pallas_call(
        kernel,
        out_shape=out_shapes,
        grid=(Bp // Bt, Tp // Tc),
        in_specs=[
            pl.BlockSpec((Tc, Bt, in_dim), lambda b, t: (t, b, 0)),  # x chunk
            pl.BlockSpec((in_dim, G), lambda b, t: (0, 0)),          # W_ih^T
            pl.BlockSpec((1, G), lambda b, t: (0, 0)),               # bias
            pl.BlockSpec((Hp, G), lambda b, t: (0, 0)),              # W_hh^T
            pl.BlockSpec((Bt, Hp), lambda b, t: (b, 0)),             # h0
            pl.BlockSpec((Bt, Hp), lambda b, t: (b, 0)),             # c0
        ],
        out_specs=[
            pl.BlockSpec((Tc, Bt, Hp), lambda b, t: (t, b, 0)),      # hidden seq
            pl.BlockSpec((Bt, Hp), lambda b, t: (b, 0)),             # resident h
            pl.BlockSpec((Bt, Hp), lambda b, t: (b, 0)),             # resident c
        ],
        scratch_shapes=[pltpu.VMEM((Tc * Bt, G), jnp.float32)],      # fused gx
        compiler_params=pltpu.CompilerParams(
            dimension_semantics=("parallel", "arbitrary"),
            vmem_limit_bytes=_clamp_vmem(est)),
    )(x, w_ih_t, bias, w_hh_t, h0, c0)


# --------------------------------------------------------------------------- #
# One-time parameter packing: transpose + per-gate lane padding (H -> Hp),
# LM-head weight transposed AND vocab-padded here (not per forward).
# --------------------------------------------------------------------------- #
def prepare_params(params, num_layers, hidden_size):
    H = hidden_size
    Hp = _round_up(H, 128)
    V = params["w_lin"].shape[0]
    prep = {"H": H, "Hp": Hp, "L": num_layers, "V": V, "embed": params["embed"]}
    for l in range(num_layers):
        w_ih_t = jnp.transpose(params[f"w_ih_{l}"])            # (in, 4H)
        w_hh_t = jnp.transpose(params[f"w_hh_{l}"])            # (H, 4H)
        bias = params[f"b_ih_{l}"] + params[f"b_hh_{l}"]       # (4H,)

        w_ih_tp = _pad_gate_cols(w_ih_t, H, Hp)                # (in, 4Hp)
        if l > 0:
            # inputs of layers > 0 are the (.., Hp)-padded outputs of layer l-1
            w_ih_tp = jnp.pad(w_ih_tp, ((0, Hp - H), (0, 0)))
        w_hh_tp = jnp.pad(_pad_gate_cols(w_hh_t, H, Hp), ((0, Hp - H), (0, 0)))
        bias_p = jnp.pad(bias.reshape(4, H),
                         ((0, 0), (0, Hp - H))).reshape(1, 4 * Hp)

        prep[f"w_ih_t_{l}"] = w_ih_tp
        prep[f"w_hh_t_{l}"] = w_hh_tp
        prep[f"bias_{l}"] = bias_p

    # LM head: (V, H) -> (Hp, Np), padded once; bias padded once.
    tn_lm = min(512, _round_up(V, 128))
    Np = _round_up(V, tn_lm)
    prep["w_lin_t"] = jnp.pad(jnp.transpose(params["w_lin"]),
                              ((0, Hp - H), (0, Np - V)))
    prep["b_lin"] = jnp.pad(params["b_lin"], (0, Np - V)).reshape(1, Np)
    prep["tn_lm"] = tn_lm
    return prep


# --------------------------------------------------------------------------- #
# Full forward (mirrors RNN.forward)
# --------------------------------------------------------------------------- #
def rnn_forward(prep, x_tokens, h, c):
    B, T = x_tokens.shape
    L, H, Hp = prep["L"], prep["H"], prep["Hp"]
    Bp = _round_up(B, 8)

    # Embedding lookup (gather) kept in plain JAX glue.
    emb = jnp.take(prep["embed"], x_tokens, axis=0)            # (B, T, E)
    x_tm = jnp.transpose(emb, (1, 0, 2))                       # (T, B, E)

    # Balanced time chunking (Tc up to 128); padded steps are masked in-kernel.
    n_chunks = -(-T // 128)
    Tc = -(-T // n_chunks)
    Tp = Tc * n_chunks
    x_tm = jnp.pad(x_tm, ((0, Tp - T), (0, Bp - B), (0, 0)))   # (Tp, Bp, E)

    h_p = jnp.pad(h, ((0, 0), (0, Bp - B), (0, Hp - H)))       # (L, Bp, Hp)
    c_p = jnp.pad(c, ((0, 0), (0, Bp - B), (0, Hp - H)))

    layer_in = x_tm
    hs, cs = [], []
    for l in range(L):
        layer_in, h_l, c_l = lstm_layer(
            layer_in, prep[f"w_ih_t_{l}"], prep[f"bias_{l}"],
            prep[f"w_hh_t_{l}"], h_p[l], c_p[l], Tc=Tc, T=T)
        hs.append(h_l)
        cs.append(c_l)

    # TODO(synk): emit last-layer output batch-first from the kernel to skip
    # this transpose + HBM round trip.
    out_bt = jnp.transpose(layer_in[:T, :B, :], (1, 0, 2))     # (B, T, Hp)
    out_flat = out_bt.reshape(B * T, Hp)
    logits = matmul_bias(out_flat, prep["w_lin_t"], prep["b_lin"],
                         prep["V"], tn=prep["tn_lm"])          # (B*T, V)

    h_out = jnp.stack(hs)[:, :B, :H]
    c_out = jnp.stack(cs)[:, :B, :H]
    return logits, (h_out, c_out)


# --------------------------------------------------------------------------- #
# Pure-JAX reference (same math, unpadded) for a correctness check
# --------------------------------------------------------------------------- #
def ref_forward(params, x_tokens, h, c):
    emb = jnp.take(params["embed"], x_tokens, axis=0)
    B, T, _ = emb.shape
    layer_in = emb
    hs, cs = [], []
    for l in range(h.shape[0]):
        w_ih = params[f"w_ih_{l}"]
        w_hh = params[f"w_hh_{l}"]
        bias = params[f"b_ih_{l}"] + params[f"b_hh_{l}"]

        def step(carry, x_t, w_ih=w_ih, w_hh=w_hh, bias=bias):
            h_p, c_p = carry
            g = x_t @ w_ih.T + h_p @ w_hh.T + bias
            H = h_p.shape[-1]
            i = jax.nn.sigmoid(g[:, :H])
            f = jax.nn.sigmoid(g[:, H:2 * H])
            gg = jnp.tanh(g[:, 2 * H:3 * H])
            o = jax.nn.sigmoid(g[:, 3 * H:])
            c_n = f * c_p + i * gg
            h_n = o * jnp.tanh(c_n)
            return (h_n, c_n), h_n

        (h_l, c_l), outs = jax.lax.scan(step, (h[l], c[l]),
                                        jnp.transpose(layer_in, (1, 0, 2)))
        hs.append(h_l)
        cs.append(c_l)
        layer_in = jnp.transpose(outs, (1, 0, 2))
    out_flat = layer_in.reshape(B * T, -1)
    logits = out_flat @ params["w_lin"].T + params["b_lin"]
    return logits, (jnp.stack(hs), jnp.stack(cs))


# --------------------------------------------------------------------------- #
# Deterministic parameter init (PyTorch-like distributions)
# --------------------------------------------------------------------------- #
def init_params(key, vocab_size, embed_size, hidden_size, num_layers):
    keys = iter(jax.random.split(key, 3 + 4 * num_layers))
    params = {}
    params["embed"] = jax.random.normal(next(keys), (vocab_size, embed_size),
                                        jnp.float32)
    bound = 1.0 / jnp.sqrt(hidden_size).astype(jnp.float32)
    for l in range(num_layers):
        in_sz = embed_size if l == 0 else hidden_size
        params[f"w_ih_{l}"] = jax.random.uniform(
            next(keys), (4 * hidden_size, in_sz), jnp.float32, -bound, bound)
        params[f"w_hh_{l}"] = jax.random.uniform(
            next(keys), (4 * hidden_size, hidden_size), jnp.float32, -bound, bound)
        params[f"b_ih_{l}"] = jax.random.uniform(
            next(keys), (4 * hidden_size,), jnp.float32, -bound, bound)
        params[f"b_hh_{l}"] = jax.random.uniform(
            next(keys), (4 * hidden_size,), jnp.float32, -bound, bound)
    params["w_lin"] = jax.random.uniform(
        next(keys), (vocab_size, hidden_size), jnp.float32, -bound, bound)
    params["b_lin"] = jax.random.uniform(
        next(keys), (vocab_size,), jnp.float32, -bound, bound)
    return params


if __name__ == "__main__":
    vocab_size, embed_size, hidden_size, num_layers = 128, 32, 32, 2
    batch, seq = 2, 8

    key = jax.random.PRNGKey(0)
    k_param, k_tok, k_h, k_c = jax.random.split(key, 4)

    params = init_params(k_param, vocab_size, embed_size, hidden_size, num_layers)
    x_tokens = jax.random.randint(k_tok, (batch, seq), 0, vocab_size, jnp.int32)
    h0 = 0.1 * jax.random.normal(k_h, (num_layers, batch, hidden_size), jnp.float32)
    c0 = 0.1 * jax.random.normal(k_c, (num_layers, batch, hidden_size), jnp.float32)

    prep = prepare_params(params, num_layers, hidden_size)

    logits, (h_out, c_out) = rnn_forward(prep, x_tokens, h0, c0)
    jax.block_until_ready((logits, h_out, c_out))

    ref_logits, (ref_h, ref_c) = ref_forward(params, x_tokens, h0, c0)
    assert logits.shape == (batch * seq, vocab_size)
    assert h_out.shape == (num_layers, batch, hidden_size)
    assert c_out.shape == (num_layers, batch, hidden_size)
    assert jnp.allclose(logits, ref_logits, atol=1e-4, rtol=1e-4)
    assert jnp.allclose(h_out, ref_h, atol=1e-4, rtol=1e-4)
    assert jnp.allclose(c_out, ref_c, atol=1e-4, rtol=1e-4)

    print("KERNEL_OK")
</pallas_src>

<mosaic_0001>
module attributes {stable_mosaic.version = 11 : i64} {
  func.func @_lstm_recurrent_kernel(%arg0: i32, %arg1: i32, %arg2: memref<8x8x32xf32, #tpu.memory_space<vmem>>, %arg3: memref<32x512xf32, #tpu.memory_space<vmem>>, %arg4: memref<1x512xf32, #tpu.memory_space<vmem>>, %arg5: memref<128x512xf32, #tpu.memory_space<vmem>>, %arg6: memref<8x128xf32, #tpu.memory_space<vmem>>, %arg7: memref<8x128xf32, #tpu.memory_space<vmem>>, %arg8: memref<8x8x128xf32, #tpu.memory_space<vmem>>, %arg9: memref<8x128xf32, #tpu.memory_space<vmem>>, %arg10: memref<8x128xf32, #tpu.memory_space<vmem>>, %arg11: memref<64x512xf32, #tpu.memory_space<vmem>>) attributes {dimension_semantics = [#tpu.dimension_semantics<parallel>, #tpu.dimension_semantics<arbitrary>], iteration_bounds = array<i64: 1, 1>, scalar_prefetch = 0 : i64, scratch_operands = 1 : i64, tpu.core_type = #tpu.core_type<tc>, window_params = [{transform_indices = @transform_0, window_bounds = array<i64: 8, 8, 32>}, {pipeline_mode = #tpu.pipeline_mode<synchronous>, transform_indices = @transform_1, window_bounds = array<i64: 32, 512>}, {pipeline_mode = #tpu.pipeline_mode<synchronous>, transform_indices = @transform_2, window_bounds = array<i64: 1, 512>}, {pipeline_mode = #tpu.pipeline_mode<synchronous>, transform_indices = @transform_3, window_bounds = array<i64: 128, 512>}, {transform_indices = @transform_4, window_bounds = array<i64: 8, 128>}, {transform_indices = @transform_5, window_bounds = array<i64: 8, 128>}, {transform_indices = @transform_6, window_bounds = array<i64: 8, 8, 128>}, {transform_indices = @transform_7, window_bounds = array<i64: 8, 128>}, {transform_indices = @transform_8, window_bounds = array<i64: 8, 128>}]} {
    %c0_i32 = arith.constant 0 : i32
    %0 = arith.cmpi eq, %arg1, %c0_i32 : i32
    %1 = arith.extui %0 : i1 to i32
    %c0_i32_0 = arith.constant 0 : i32
    %2 = arith.cmpi ne, %1, %c0_i32_0 : i32
    scf.if %2 {
      %c0_98 = arith.constant 0 : index
      %c0_99 = arith.constant 0 : index
      %303 = vector.load %arg6[%c0_98, %c0_99] : memref<8x128xf32, #tpu.memory_space<vmem>>, vector<8x128xf32>
      %c0_100 = arith.constant 0 : index
      %c0_101 = arith.constant 0 : index
      %304 = vector.load %arg9[%c0_100, %c0_101] : memref<8x128xf32, #tpu.memory_space<vmem>>, vector<8x128xf32>
      tpu.vector_store %arg9[%c0_100, %c0_101], %303 {strides = array<i32>} : memref<8x128xf32, #tpu.memory_space<vmem>>, vector<8x128xf32>,
      %c0_102 = arith.constant 0 : index
      %c0_103 = arith.constant 0 : index
      %305 = vector.load %arg7[%c0_102, %c0_103] : memref<8x128xf32, #tpu.memory_space<vmem>>, vector<8x128xf32>
      %c0_104 = arith.constant 0 : index
      %c0_105 = arith.constant 0 : index
      %306 = vector.load %arg10[%c0_104, %c0_105] : memref<8x128xf32, #tpu.memory_space<vmem>>, vector<8x128xf32>
      tpu.vector_store %arg10[%c0_104, %c0_105], %305 {strides = array<i32>} : memref<8x128xf32, #tpu.memory_space<vmem>>, vector<8x128xf32>,
    } else {
    }
    %c0 = arith.constant 0 : index
    %c0_1 = arith.constant 0 : index
    %c0_2 = arith.constant 0 : index
    %3 = vector.load %arg2[%c0, %c0_1, %c0_2] : memref<8x8x32xf32, #tpu.memory_space<vmem>>, vector<8x8x32xf32>
    %4 = vector.shape_cast %3 : vector<8x8x32xf32> to vector<64x32xf32>
    %c0_3 = arith.constant 0 : index
    %c0_4 = arith.constant 0 : index
    %5 = vector.load %arg3[%c0_3, %c0_4] : memref<32x512xf32, #tpu.memory_space<vmem>>, vector<32x512xf32>
    %cst = arith.constant dense<0.000000e+00> : vector<64x512xf32>
    %6 = tpu.matmul %4, %5, %cst {dimension_numbers = #tpu.dot_dimension_numbers<[1], [0], [0], [1], [0, 0, 1, 1], [], []>} : vector<64x32xf32>, vector<32x512xf32>, vector<64x512xf32> -> vector<64x512xf32>
    %c0_5 = arith.constant 0 : index
    %c0_6 = arith.constant 0 : index
    %7 = vector.load %arg4[%c0_5, %c0_6] : memref<1x512xf32, #tpu.memory_space<vmem>>, vector<1x512xf32>
    %8 = vector.broadcast %7 : vector<1x512xf32> to vector<64x512xf32>
    %9 = arith.addf %6, %8 : vector<64x512xf32>
    %c0_7 = arith.constant 0 : index
    %c0_8 = arith.constant 0 : index
    %10 = vector.load %arg11[%c0_7, %c0_8] : memref<64x512xf32, #tpu.memory_space<vmem>>, vector<64x512xf32>
    tpu.vector_store %arg11[%c0_7, %c0_8], %9 {strides = array<i32>} : memref<64x512xf32, #tpu.memory_space<vmem>>, vector<64x512xf32>,
    %c0_9 = arith.constant 0 : index
    %c0_10 = arith.constant 0 : index
    %11 = vector.load %arg9[%c0_9, %c0_10] : memref<8x128xf32, #tpu.memory_space<vmem>>, vector<8x128xf32>
    %c0_11 = arith.constant 0 : index
    %c0_12 = arith.constant 0 : index
    %12 = vector.load %arg10[%c0_11, %c0_12] : memref<8x128xf32, #tpu.memory_space<vmem>>, vector<8x128xf32>
    %c0_i32_13 = arith.constant 0 : i32
    %c8_i32 = arith.constant 8 : i32
    %13 = arith.muli %c0_i32_13, %c8_i32 : i32
    %14 = tpu.assume_multiple %13, 8 : i32
    %15 = arith.index_cast %14 : i32 to index
    %c0_14 = arith.constant 0 : index
    %16 = vector.load %arg11[%15, %c0_14] : memref<64x512xf32, #tpu.memory_space<vmem>>, vector<8x512xf32>
    %c0_15 = arith.constant 0 : index
    %c0_16 = arith.constant 0 : index
    %17 = vector.load %arg5[%c0_15, %c0_16] : memref<128x512xf32, #tpu.memory_space<vmem>>, vector<128x512xf32>
    %cst_17 = arith.constant dense<0.000000e+00> : vector<8x512xf32>
    %18 = tpu.matmul %11, %17, %cst_17 {dimension_numbers = #tpu.dot_dimension_numbers<[1], [0], [0], [1], [0, 0, 1, 1], [], []>} : vector<8x128xf32>, vector<128x512xf32>, vector<8x512xf32> -> vector<8x512xf32>
    %19 = arith.addf %16, %18 : vector<8x512xf32>
    %20 = vector.extract_strided_slice %19 {offsets = [0, 0], sizes = [8, 128], strides = [1, 1]} : vector<8x512xf32> to vector<8x128xf32>
    %21 = arith.negf %20 : vector<8x128xf32>
    %22 = math.exp %21 : vector<8x128xf32>
    %cst_18 = arith.constant 1.000000e+00 : f32
    %23 = vector.broadcast %cst_18 : f32 to vector<8x128xf32>
    %24 = arith.addf %23, %22 : vector<8x128xf32>
    %25 = arith.divf %23, %24 : vector<8x128xf32>
    %26 = vector.extract_strided_slice %19 {offsets = [0, 128], sizes = [8, 128], strides = [1, 1]} : vector<8x512xf32> to vector<8x128xf32>
    %27 = arith.negf %26 : vector<8x128xf32>
    %28 = math.exp %27 : vector<8x128xf32>
    %cst_19 = arith.constant 1.000000e+00 : f32
    %29 = vector.broadcast %cst_19 : f32 to vector<8x128xf32>
    %30 = arith.addf %29, %28 : vector<8x128xf32>
    %31 = arith.divf %29, %30 : vector<8x128xf32>
    %32 = vector.extract_strided_slice %19 {offsets = [0, 256], sizes = [8, 128], strides = [1, 1]} : vector<8x512xf32> to vector<8x128xf32>
    %33 = math.tanh %32 : vector<8x128xf32>
    %34 = vector.extract_strided_slice %19 {offsets = [0, 384], sizes = [8, 128], strides = [1, 1]} : vector<8x512xf32> to vector<8x128xf32>
    %35 = arith.negf %34 : vector<8x128xf32>
    %36 = math.exp %35 : vector<8x128xf32>
    %cst_20 = arith.constant 1.000000e+00 : f32
    %37 = vector.broadcast %cst_20 : f32 to vector<8x128xf32>
    %38 = arith.addf %37, %36 : vector<8x128xf32>
    %39 = arith.divf %37, %38 : vector<8x128xf32>
    %40 = arith.mulf %31, %12 : vector<8x128xf32>
    %41 = arith.mulf %25, %33 : vector<8x128xf32>
    %42 = arith.addf %40, %41 : vector<8x128xf32>
    %43 = math.tanh %42 : vector<8x128xf32>
    %44 = arith.mulf %39, %43 : vector<8x128xf32>
    %45 = arith.index_cast %c0_i32_13 : i32 to index
    %c0_21 = arith.constant 0 : index
    %c0_22 = arith.constant 0 : index
    %46 = vector.load %arg8[%45, %c0_21, %c0_22] : memref<8x8x128xf32, #tpu.memory_space<vmem>>, vector<1x8x128xf32>
    %47 = vector.shape_cast %46 : vector<1x8x128xf32> to vector<8x128xf32>
    %48 = vector.shape_cast %44 : vector<8x128xf32> to vector<1x8x128xf32>
    tpu.vector_store %arg8[%45, %c0_21, %c0_22], %48 {strides = array<i32>} : memref<8x8x128xf32, #tpu.memory_space<vmem>>, vector<1x8x128xf32>,
    %c1_i32 = arith.constant 1 : i32
    %c8_i32_23 = arith.constant 8 : i32
    %49 = arith.muli %c1_i32, %c8_i32_23 : i32
    %50 = tpu.assume_multiple %49, 8 : i32
    %51 = arith.index_cast %50 : i32 to index
    %c0_24 = arith.constant 0 : index
    %52 = vector.load %arg11[%51, %c0_24] : memref<64x512xf32, #tpu.memory_space<vmem>>, vector<8x512xf32>
    %c0_25 = arith.constant 0 : index
    %c0_26 = arith.constant 0 : index
    %53 = vector.load %arg5[%c0_25, %c0_26] : memref<128x512xf32, #tpu.memory_space<vmem>>, vector<128x512xf32>
    %cst_27 = arith.constant dense<0.000000e+00> : vector<8x512xf32>
    %54 = tpu.matmul %44, %53, %cst_27 {dimension_numbers = #tpu.dot_dimension_numbers<[1], [0], [0], [1], [0, 0, 1, 1], [], []>} : vector<8x128xf32>, vector<128x512xf32>, vector<8x512xf32> -> vector<8x512xf32>
    %55 = arith.addf %52, %54 : vector<8x512xf32>
    %56 = vector.extract_strided_slice %55 {offsets = [0, 0], sizes = [8, 128], strides = [1, 1]} : vector<8x512xf32> to vector<8x128xf32>
    %57 = arith.negf %56 : vector<8x128xf32>
    %58 = math.exp %57 : vector<8x128xf32>
    %cst_28 = arith.constant 1.000000e+00 : f32
    %59 = vector.broadcast %cst_28 : f32 to vector<8x128xf32>
    %60 = arith.addf %59, %58 : vector<8x128xf32>
    %61 = arith.divf %59, %60 : vector<8x128xf32>
    %62 = vector.extract_strided_slice %55 {offsets = [0, 128], sizes = [8, 128], strides = [1, 1]} : vector<8x512xf32> to vector<8x128xf32>
    %63 = arith.negf %62 : vector<8x128xf32>
    %64 = math.exp %63 : vector<8x128xf32>
    %cst_29 = arith.constant 1.000000e+00 : f32
    %65 = vector.broadcast %cst_29 : f32 to vector<8x128xf32>
    %66 = arith.addf %65, %64 : vector<8x128xf32>
    %67 = arith.divf %65, %66 : vector<8x128xf32>
    %68 = vector.extract_strided_slice %55 {offsets = [0, 256], sizes = [8, 128], strides = [1, 1]} : vector<8x512xf32> to vector<8x128xf32>
    %69 = math.tanh %68 : vector<8x128xf32>
    %70 = vector.extract_strided_slice %55 {offsets = [0, 384], sizes = [8, 128], strides = [1, 1]} : vector<8x512xf32> to vector<8x128xf32>
    %71 = arith.negf %70 : vector<8x128xf32>
    %72 = math.exp %71 : vector<8x128xf32>
    %cst_30 = arith.constant 1.000000e+00 : f32
    %73 = vector.broadcast %cst_30 : f32 to vector<8x128xf32>
    %74 = arith.addf %73, %72 : vector<8x128xf32>
    %75 = arith.divf %73, %74 : vector<8x128xf32>
    %76 = arith.mulf %67, %42 : vector<8x128xf32>
    %77 = arith.mulf %61, %69 : vector<8x128xf32>
    %78 = arith.addf %76, %77 : vector<8x128xf32>
    %79 = math.tanh %78 : vector<8x128xf32>
    %80 = arith.mulf %75, %79 : vector<8x128xf32>
    %81 = arith.index_cast %c1_i32 : i32 to index
    %c0_31 = arith.constant 0 : index
    %c0_32 = arith.constant 0 : index
    %82 = vector.load %arg8[%81, %c0_31, %c0_32] : memref<8x8x128xf32, #tpu.memory_space<vmem>>, vector<1x8x128xf32>
    %83 = vector.shape_cast %82 : vector<1x8x128xf32> to vector<8x128xf32>
    %84 = vector.shape_cast %80 : vector<8x128xf32> to vector<1x8x128xf32>
    tpu.vector_store %arg8[%81, %c0_31, %c0_32], %84 {strides = array<i32>} : memref<8x8x128xf32, #tpu.memory_space<vmem>>, vector<1x8x128xf32>,
    %c2_i32 = arith.constant 2 : i32
    %c8_i32_33 = arith.constant 8 : i32
    %85 = arith.muli %c2_i32, %c8_i32_33 : i32
    %86 = tpu.assume_multiple %85, 8 : i32
    %87 = arith.index_cast %86 : i32 to index
    %c0_34 = arith.constant 0 : index
    %88 = vector.load %arg11[%87, %c0_34] : memref<64x512xf32, #tpu.memory_space<vmem>>, vector<8x512xf32>
    %c0_35 = arith.constant 0 : index
    %c0_36 = arith.constant 0 : index
    %89 = vector.load %arg5[%c0_35, %c0_36] : memref<128x512xf32, #tpu.memory_space<vmem>>, vector<128x512xf32>
    %cst_37 = arith.constant dense<0.000000e+00> : vector<8x512xf32>
    %90 = tpu.matmul %80, %89, %cst_37 {dimension_numbers = #tpu.dot_dimension_numbers<[1], [0], [0], [1], [0, 0, 1, 1], [], []>} : vector<8x128xf32>, vector<128x512xf32>, vector<8x512xf32> -> vector<8x512xf32>
    %91 = arith.addf %88, %90 : vector<8x512xf32>
    %92 = vector.extract_strided_slice %91 {offsets = [0, 0], sizes = [8, 128], strides = [1, 1]} : vector<8x512xf32> to vector<8x128xf32>
    %93 = arith.negf %92 : vector<8x128xf32>
    %94 = math.exp %93 : vector<8x128xf32>
    %cst_38 = arith.constant 1.000000e+00 : f32
    %95 = vector.broadcast %cst_38 : f32 to vector<8x128xf32>
    %96 = arith.addf %95, %94 : vector<8x128xf32>
    %97 = arith.divf %95, %96 : vector<8x128xf32>
    %98 = vector.extract_strided_slice %91 {offsets = [0, 128], sizes = [8, 128], strides = [1, 1]} : vector<8x512xf32> to vector<8x128xf32>
    %99 = arith.negf %98 : vector<8x128xf32>
    %100 = math.exp %99 : vector<8x128xf32>
    %cst_39 = arith.constant 1.000000e+00 : f32
    %101 = vector.broadcast %cst_39 : f32 to vector<8x128xf32>
    %102 = arith.addf %101, %100 : vector<8x128xf32>
    %103 = arith.divf %101, %102 : vector<8x128xf32>
    %104 = vector.extract_strided_slice %91 {offsets = [0, 256], sizes = [8, 128], strides = [1, 1]} : vector<8x512xf32> to vector<8x128xf32>
    %105 = math.tanh %104 : vector<8x128xf32>
    %106 = vector.extract_strided_slice %91 {offsets = [0, 384], sizes = [8, 128], strides = [1, 1]} : vector<8x512xf32> to vector<8x128xf32>
    %107 = arith.negf %106 : vector<8x128xf32>
    %108 = math.exp %107 : vector<8x128xf32>
    %cst_40 = arith.constant 1.000000e+00 : f32
    %109 = vector.broadcast %cst_40 : f32 to vector<8x128xf32>
    %110 = arith.addf %109, %108 : vector<8x128xf32>
    %111 = arith.divf %109, %110 : vector<8x128xf32>
    %112 = arith.mulf %103, %78 : vector<8x128xf32>
    %113 = arith.mulf %97, %105 : vector<8x128xf32>
    %114 = arith.addf %112, %113 : vector<8x128xf32>
    %115 = math.tanh %114 : vector<8x128xf32>
    %116 = arith.mulf %111, %115 : vector<8x128xf32>
    %117 = arith.index_cast %c2_i32 : i32 to index
    %c0_41 = arith.constant 0 : index
    %c0_42 = arith.constant 0 : index
    %118 = vector.load %arg8[%117, %c0_41, %c0_42] : memref<8x8x128xf32, #tpu.memory_space<vmem>>, vector<1x8x128xf32>
    %119 = vector.shape_cast %118 : vector<1x8x128xf32> to vector<8x128xf32>
    %120 = vector.shape_cast %116 : vector<8x128xf32> to vector<1x8x128xf32>
    tpu.vector_store %arg8[%117, %c0_41, %c0_42], %120 {strides = array<i32>} : memref<8x8x128xf32, #tpu.memory_space<vmem>>, vector<1x8x128xf32>,
    %c3_i32 = arith.constant 3 : i32
    %c8_i32_43 = arith.constant 8 : i32
    %121 = arith.muli %c3_i32, %c8_i32_43 : i32
    %122 = tpu.assume_multiple %121, 8 : i32
    %123 = arith.index_cast %122 : i32 to index
    %c0_44 = arith.constant 0 : index
    %124 = vector.load %arg11[%123, %c0_44] : memref<64x512xf32, #tpu.memory_space<vmem>>, vector<8x512xf32>
    %c0_45 = arith.constant 0 : index
    %c0_46 = arith.constant 0 : index
    %125 = vector.load %arg5[%c0_45, %c0_46] : memref<128x512xf32, #tpu.memory_space<vmem>>, vector<128x512xf32>
    %cst_47 = arith.constant dense<0.000000e+00> : vector<8x512xf32>
    %126 = tpu.matmul %116, %125, %cst_47 {dimension_numbers = #tpu.dot_dimension_numbers<[1], [0], [0], [1], [0, 0, 1, 1], [], []>} : vector<8x128xf32>, vector<128x512xf32>, vector<8x512xf32> -> vector<8x512xf32>
    %127 = arith.addf %124, %126 : vector<8x512xf32>
    %128 = vector.extract_strided_slice %127 {offsets = [0, 0], sizes = [8, 128], strides = [1, 1]} : vector<8x512xf32> to vector<8x128xf32>
    %129 = arith.negf %128 : vector<8x128xf32>
    %130 = math.exp %129 : vector<8x128xf32>
    %cst_48 = arith.constant 1.000000e+00 : f32
    %131 = vector.broadcast %cst_48 : f32 to vector<8x128xf32>
    %132 = arith.addf %131, %130 : vector<8x128xf32>
    %133 = arith.divf %131, %132 : vector<8x128xf32>
    %134 = vector.extract_strided_slice %127 {offsets = [0, 128], sizes = [8, 128], strides = [1, 1]} : vector<8x512xf32> to vector<8x128xf32>
    %135 = arith.negf %134 : vector<8x128xf32>
    %136 = math.exp %135 : vector<8x128xf32>
    %cst_49 = arith.constant 1.000000e+00 : f32
    %137 = vector.broadcast %cst_49 : f32 to vector<8x128xf32>
    %138 = arith.addf %137, %136 : vector<8x128xf32>
    %139 = arith.divf %137, %138 : vector<8x128xf32>
    %140 = vector.extract_strided_slice %127 {offsets = [0, 256], sizes = [8, 128], strides = [1, 1]} : vector<8x512xf32> to vector<8x128xf32>
    %141 = math.tanh %140 : vector<8x128xf32>
    %142 = vector.extract_strided_slice %127 {offsets = [0, 384], sizes = [8, 128], strides = [1, 1]} : vector<8x512xf32> to vector<8x128xf32>
    %143 = arith.negf %142 : vector<8x128xf32>
    %144 = math.exp %143 : vector<8x128xf32>
    %cst_50 = arith.constant 1.000000e+00 : f32
    %145 = vector.broadcast %cst_50 : f32 to vector<8x128xf32>
    %146 = arith.addf %145, %144 : vector<8x128xf32>
    %147 = arith.divf %145, %146 : vector<8x128xf32>
    %148 = arith.mulf %139, %114 : vector<8x128xf32>
    %149 = arith.mulf %133, %141 : vector<8x128xf32>
    %150 = arith.addf %148, %149 : vector<8x128xf32>
    %151 = math.tanh %150 : vector<8x128xf32>
    %152 = arith.mulf %147, %151 : vector<8x128xf32>
    %153 = arith.index_cast %c3_i32 : i32 to index
    %c0_51 = arith.constant 0 : index
    %c0_52 = arith.constant 0 : index
    %154 = vector.load %arg8[%153, %c0_51, %c0_52] : memref<8x8x128xf32, #tpu.memory_space<vmem>>, vector<1x8x128xf32>
    %155 = vector.shape_cast %154 : vector<1x8x128xf32> to vector<8x128xf32>
    %156 = vector.shape_cast %152 : vector<8x128xf32> to vector<1x8x128xf32>
    tpu.vector_store %arg8[%153, %c0_51, %c0_52], %156 {strides = array<i32>} : memref<8x8x128xf32, #tpu.memory_space<vmem>>, vector<1x8x128xf32>,
    %c4_i32 = arith.constant 4 : i32
    %c8_i32_53 = arith.constant 8 : i32
    %157 = arith.muli %c4_i32, %c8_i32_53 : i32
    %158 = tpu.assume_multiple %157, 8 : i32
    %159 = arith.index_cast %158 : i32 to index
    %c0_54 = arith.constant 0 : index
    %160 = vector.load %arg11[%159, %c0_54] : memref<64x512xf32, #tpu.memory_space<vmem>>, vector<8x512xf32>
    %c0_55 = arith.constant 0 : index
    %c0_56 = arith.constant 0 : index
    %161 = vector.load %arg5[%c0_55, %c0_56] : memref<128x512xf32, #tpu.memory_space<vmem>>, vector<128x512xf32>
    %cst_57 = arith.constant dense<0.000000e+00> : vector<8x512xf32>
    %162 = tpu.matmul %152, %161, %cst_57 {dimension_numbers = #tpu.dot_dimension_numbers<[1], [0], [0], [1], [0, 0, 1, 1], [], []>} : vector<8x128xf32>, vector<128x512xf32>, vector<8x512xf32> -> vector<8x512xf32>
    %163 = arith.addf %160, %162 : vector<8x512xf32>
    %164 = vector.extract_strided_slice %163 {offsets = [0, 0], sizes = [8, 128], strides = [1, 1]} : vector<8x512xf32> to vector<8x128xf32>
    %165 = arith.negf %164 : vector<8x128xf32>
    %166 = math.exp %165 : vector<8x128xf32>
    %cst_58 = arith.constant 1.000000e+00 : f32
    %167 = vector.broadcast %cst_58 : f32 to vector<8x128xf32>
    %168 = arith.addf %167, %166 : vector<8x128xf32>
    %169 = arith.divf %167, %168 : vector<8x128xf32>
    %170 = vector.extract_strided_slice %163 {offsets = [0, 128], sizes = [8, 128], strides = [1, 1]} : vector<8x512xf32> to vector<8x128xf32>
    %171 = arith.negf %170 : vector<8x128xf32>
    %172 = math.exp %171 : vector<8x128xf32>
    %cst_59 = arith.constant 1.000000e+00 : f32
    %173 = vector.broadcast %cst_59 : f32 to vector<8x128xf32>
    %174 = arith.addf %173, %172 : vector<8x128xf32>
    %175 = arith.divf %173, %174 : vector<8x128xf32>
    %176 = vector.extract_strided_slice %163 {offsets = [0, 256], sizes = [8, 128], strides = [1, 1]} : vector<8x512xf32> to vector<8x128xf32>
    %177 = math.tanh %176 : vector<8x128xf32>
    %178 = vector.extract_strided_slice %163 {offsets = [0, 384], sizes = [8, 128], strides = [1, 1]} : vector<8x512xf32> to vector<8x128xf32>
    %179 = arith.negf %178 : vector<8x128xf32>
    %180 = math.exp %179 : vector<8x128xf32>
    %cst_60 = arith.constant 1.000000e+00 : f32
    %181 = vector.broadcast %cst_60 : f32 to vector<8x128xf32>
    %182 = arith.addf %181, %180 : vector<8x128xf32>
    %183 = arith.divf %181, %182 : vector<8x128xf32>
    %184 = arith.mulf %175, %150 : vector<8x128xf32>
    %185 = arith.mulf %169, %177 : vector<8x128xf32>
    %186 = arith.addf %184, %185 : vector<8x128xf32>
    %187 = math.tanh %186 : vector<8x128xf32>
    %188 = arith.mulf %183, %187 : vector<8x128xf32>
    %189 = arith.index_cast %c4_i32 : i32 to index
    %c0_61 = arith.constant 0 : index
    %c0_62 = arith.constant 0 : index
    %190 = vector.load %arg8[%189, %c0_61, %c0_62] : memref<8x8x128xf32, #tpu.memory_space<vmem>>, vector<1x8x128xf32>
    %191 = vector.shape_cast %190 : vector<1x8x128xf32> to vector<8x128xf32>
    %192 = vector.shape_cast %188 : vector<8x128xf32> to vector<1x8x128xf32>
    tpu.vector_store %arg8[%189, %c0_61, %c0_62], %192 {strides = array<i32>} : memref<8x8x128xf32, #tpu.memory_space<vmem>>, vector<1x8x128xf32>,
    %c5_i32 = arith.constant 5 : i32
    %c8_i32_63 = arith.constant 8 : i32
    %193 = arith.muli %c5_i32, %c8_i32_63 : i32
    %194 = tpu.assume_multiple %193, 8 : i32
    %195 = arith.index_cast %194 : i32 to index
    %c0_64 = arith.constant 0 : index
    %196 = vector.load %arg11[%195, %c0_64] : memref<64x512xf32, #tpu.memory_space<vmem>>, vector<8x512xf32>
    %c0_65 = arith.constant 0 : index
    %c0_66 = arith.constant 0 : index
    %197 = vector.load %arg5[%c0_65, %c0_66] : memref<128x512xf32, #tpu.memory_space<vmem>>, vector<128x512xf32>
    %cst_67 = arith.constant dense<0.000000e+00> : vector<8x512xf32>
    %198 = tpu.matmul %188, %197, %cst_67 {dimension_numbers = #tpu.dot_dimension_numbers<[1], [0], [0], [1], [0, 0, 1, 1], [], []>} : vector<8x128xf32>, vector<128x512xf32>, vector<8x512xf32> -> vector<8x512xf32>
    %199 = arith.addf %196, %198 : vector<8x512xf32>
    %200 = vector.extract_strided_slice %199 {offsets = [0, 0], sizes = [8, 128], strides = [1, 1]} : vector<8x512xf32> to vector<8x128xf32>
    %201 = arith.negf %200 : vector<8x128xf32>
    %202 = math.exp %201 : vector<8x128xf32>
    %cst_68 = arith.constant 1.000000e+00 : f32
    %203 = vector.broadcast %cst_68 : f32 to vector<8x128xf32>
    %204 = arith.addf %203, %202 : vector<8x128xf32>
    %205 = arith.divf %203, %204 : vector<8x128xf32>
    %206 = vector.extract_strided_slice %199 {offsets = [0, 128], sizes = [8, 128], strides = [1, 1]} : vector<8x512xf32> to vector<8x128xf32>
    %207 = arith.negf %206 : vector<8x128xf32>
    %208 = math.exp %207 : vector<8x128xf32>
    %cst_69 = arith.constant 1.000000e+00 : f32
    %209 = vector.broadcast %cst_69 : f32 to vector<8x128xf32>
    %210 = arith.addf %209, %208 : vector<8x128xf32>
    %211 = arith.divf %209, %210 : vector<8x128xf32>
    %212 = vector.extract_strided_slice %199 {offsets = [0, 256], sizes = [8, 128], strides = [1, 1]} : vector<8x512xf32> to vector<8x128xf32>
    %213 = math.tanh %212 : vector<8x128xf32>
    %214 = vector.extract_strided_slice %199 {offsets = [0, 384], sizes = [8, 128], strides = [1, 1]} : vector<8x512xf32> to vector<8x128xf32>
    %215 = arith.negf %214 : vector<8x128xf32>
    %216 = math.exp %215 : vector<8x128xf32>
    %cst_70 = arith.constant 1.000000e+00 : f32
    %217 = vector.broadcast %cst_70 : f32 to vector<8x128xf32>
    %218 = arith.addf %217, %216 : vector<8x128xf32>
    %219 = arith.divf %217, %218 : vector<8x128xf32>
    %220 = arith.mulf %211, %186 : vector<8x128xf32>
    %221 = arith.mulf %205, %213 : vector<8x128xf32>
    %222 = arith.addf %220, %221 : vector<8x128xf32>
    %223 = math.tanh %222 : vector<8x128xf32>
    %224 = arith.mulf %219, %223 : vector<8x128xf32>
    %225 = arith.index_cast %c5_i32 : i32 to index
    %c0_71 = arith.constant 0 : index
    %c0_72 = arith.constant 0 : index
    %226 = vector.load %arg8[%225, %c0_71, %c0_72] : memref<8x8x128xf32, #tpu.memory_space<vmem>>, vector<1x8x128xf32>
    %227 = vector.shape_cast %226 : vector<1x8x128xf32> to vector<8x128xf32>
    %228 = vector.shape_cast %224 : vector<8x128xf32> to vector<1x8x128xf32>
    tpu.vector_store %arg8[%225, %c0_71, %c0_72], %228 {strides = array<i32>} : memref<8x8x128xf32, #tpu.memory_space<vmem>>, vector<1x8x128xf32>,
    %c6_i32 = arith.constant 6 : i32
    %c8_i32_73 = arith.constant 8 : i32
    %229 = arith.muli %c6_i32, %c8_i32_73 : i32
    %230 = tpu.assume_multiple %229, 8 : i32
    %231 = arith.index_cast %230 : i32 to index
    %c0_74 = arith.constant 0 : index
    %232 = vector.load %arg11[%231, %c0_74] : memref<64x512xf32, #tpu.memory_space<vmem>>, vector<8x512xf32>
    %c0_75 = arith.constant 0 : index
    %c0_76 = arith.constant 0 : index
    %233 = vector.load %arg5[%c0_75, %c0_76] : memref<128x512xf32, #tpu.memory_space<vmem>>, vector<128x512xf32>
    %cst_77 = arith.constant dense<0.000000e+00> : vector<8x512xf32>
    %234 = tpu.matmul %224, %233, %cst_77 {dimension_numbers = #tpu.dot_dimension_numbers<[1], [0], [0], [1], [0, 0, 1, 1], [], []>} : vector<8x128xf32>, vector<128x512xf32>, vector<8x512xf32> -> vector<8x512xf32>
    %235 = arith.addf %232, %234 : vector<8x512xf32>
    %236 = vector.extract_strided_slice %235 {offsets = [0, 0], sizes = [8, 128], strides = [1, 1]} : vector<8x512xf32> to vector<8x128xf32>
    %237 = arith.negf %236 : vector<8x128xf32>
    %238 = math.exp %237 : vector<8x128xf32>
    %cst_78 = arith.constant 1.000000e+00 : f32
    %239 = vector.broadcast %cst_78 : f32 to vector<8x128xf32>
    %240 = arith.addf %239, %238 : vector<8x128xf32>
    %241 = arith.divf %239, %240 : vector<8x128xf32>
    %242 = vector.extract_strided_slice %235 {offsets = [0, 128], sizes = [8, 128], strides = [1, 1]} : vector<8x512xf32> to vector<8x128xf32>
    %243 = arith.negf %242 : vector<8x128xf32>
    %244 = math.exp %243 : vector<8x128xf32>
    %cst_79 = arith.constant 1.000000e+00 : f32
    %245 = vector.broadcast %cst_79 : f32 to vector<8x128xf32>
    %246 = arith.addf %245, %244 : vector<8x128xf32>
    %247 = arith.divf %245, %246 : vector<8x128xf32>
    %248 = vector.extract_strided_slice %235 {offsets = [0, 256], sizes = [8, 128], strides = [1, 1]} : vector<8x512xf32> to vector<8x128xf32>
    %249 = math.tanh %248 : vector<8x128xf32>
    %250 = vector.extract_strided_slice %235 {offsets = [0, 384], sizes = [8, 128], strides = [1, 1]} : vector<8x512xf32> to vector<8x128xf32>
    %251 = arith.negf %250 : vector<8x128xf32>
    %252 = math.exp %251 : vector<8x128xf32>
    %cst_80 = arith.constant 1.000000e+00 : f32
    %253 = vector.broadcast %cst_80 : f32 to vector<8x128xf32>
    %254 = arith.addf %253, %252 : vector<8x128xf32>
    %255 = arith.divf %253, %254 : vector<8x128xf32>
    %256 = arith.mulf %247, %222 : vector<8x128xf32>
    %257 = arith.mulf %241, %249 : vector<8x128xf32>
    %258 = arith.addf %256, %257 : vector<8x128xf32>
    %259 = math.tanh %258 : vector<8x128xf32>
    %260 = arith.mulf %255, %259 : vector<8x128xf32>
    %261 = arith.index_cast %c6_i32 : i32 to index
    %c0_81 = arith.constant 0 : index
    %c0_82 = arith.constant 0 : index
    %262 = vector.load %arg8[%261, %c0_81, %c0_82] : memref<8x8x128xf32, #tpu.memory_space<vmem>>, vector<1x8x128xf32>
    %263 = vector.shape_cast %262 : vector<1x8x128xf32> to vector<8x128xf32>
    %264 = vector.shape_cast %260 : vector<8x128xf32> to vector<1x8x128xf32>
    tpu.vector_store %arg8[%261, %c0_81, %c0_82], %264 {strides = array<i32>} : memref<8x8x128xf32, #tpu.memory_space<vmem>>, vector<1x8x128xf32>,
    %c7_i32 = arith.constant 7 : i32
    %c8_i32_83 = arith.constant 8 : i32
    %265 = arith.muli %c7_i32, %c8_i32_83 : i32
    %266 = tpu.assume_multiple %265, 8 : i32
    %267 = arith.index_cast %266 : i32 to index
    %c0_84 = arith.constant 0 : index
    %268 = vector.load %arg11[%267, %c0_84] : memref<64x512xf32, #tpu.memory_space<vmem>>, vector<8x512xf32>
    %c0_85 = arith.constant 0 : index
    %c0_86 = arith.constant 0 : index
    %269 = vector.load %arg5[%c0_85, %c0_86] : memref<128x512xf32, #tpu.memory_space<vmem>>, vector<128x512xf32>
    %cst_87 = arith.constant dense<0.000000e+00> : vector<8x512xf32>
    %270 = tpu.matmul %260, %269, %cst_87 {dimension_numbers = #tpu.dot_dimension_numbers<[1], [0], [0], [1], [0, 0, 1, 1], [], []>} : vector<8x128xf32>, vector<128x512xf32>, vector<8x512xf32> -> vector<8x512xf32>
    %271 = arith.addf %268, %270 : vector<8x512xf32>
    %272 = vector.extract_strided_slice %271 {offsets = [0, 0], sizes = [8, 128], strides = [1, 1]} : vector<8x512xf32> to vector<8x128xf32>
    %273 = arith.negf %272 : vector<8x128xf32>
    %274 = math.exp %273 : vector<8x128xf32>
    %cst_88 = arith.constant 1.000000e+00 : f32
    %275 = vector.broadcast %cst_88 : f32 to vector<8x128xf32>
    %276 = arith.addf %275, %274 : vector<8x128xf32>
    %277 = arith.divf %275, %276 : vector<8x128xf32>
    %278 = vector.extract_strided_slice %271 {offsets = [0, 128], sizes = [8, 128], strides = [1, 1]} : vector<8x512xf32> to vector<8x128xf32>
    %279 = arith.negf %278 : vector<8x128xf32>
    %280 = math.exp %279 : vector<8x128xf32>
    %cst_89 = arith.constant 1.000000e+00 : f32
    %281 = vector.broadcast %cst_89 : f32 to vector<8x128xf32>
    %282 = arith.addf %281, %280 : vector<8x128xf32>
    %283 = arith.divf %281, %282 : vector<8x128xf32>
    %284 = vector.extract_strided_slice %271 {offsets = [0, 256], sizes = [8, 128], strides = [1, 1]} : vector<8x512xf32> to vector<8x128xf32>
    %285 = math.tanh %284 : vector<8x128xf32>
    %286 = vector.extract_strided_slice %271 {offsets = [0, 384], sizes = [8, 128], strides = [1, 1]} : vector<8x512xf32> to vector<8x128xf32>
    %287 = arith.negf %286 : vector<8x128xf32>
    %288 = math.exp %287 : vector<8x128xf32>
    %cst_90 = arith.constant 1.000000e+00 : f32
    %289 = vector.broadcast %cst_90 : f32 to vector<8x128xf32>
    %290 = arith.addf %289, %288 : vector<8x128xf32>
    %291 = arith.divf %289, %290 : vector<8x128xf32>
    %292 = arith.mulf %283, %258 : vector<8x128xf32>
    %293 = arith.mulf %277, %285 : vector<8x128xf32>
    %294 = arith.addf %292, %293 : vector<8x128xf32>
    %295 = math.tanh %294 : vector<8x128xf32>
    %296 = arith.mulf %291, %295 : vector<8x128xf32>
    %297 = arith.index_cast %c7_i32 : i32 to index
    %c0_91 = arith.constant 0 : index
    %c0_92 = arith.constant 0 : index
    %298 = vector.load %arg8[%297, %c0_91, %c0_92] : memref<8x8x128xf32, #tpu.memory_space<vmem>>, vector<1x8x128xf32>
    %299 = vector.shape_cast %298 : vector<1x8x128xf32> to vector<8x128xf32>
    %300 = vector.shape_cast %296 : vector<8x128xf32> to vector<1x8x128xf32>
    tpu.vector_store %arg8[%297, %c0_91, %c0_92], %300 {strides = array<i32>} : memref<8x8x128xf32, #tpu.memory_space<vmem>>, vector<1x8x128xf32>,
    %c8_i32_93 = arith.constant 8 : i32
    %c0_94 = arith.constant 0 : index
    %c0_95 = arith.constant 0 : index
    %301 = vector.load %arg9[%c0_94, %c0_95] : memref<8x128xf32, #tpu.memory_space<vmem>>, vector<8x128xf32>
    tpu.vector_store %arg9[%c0_94, %c0_95], %296 {strides = array<i32>} : memref<8x128xf32, #tpu.memory_space<vmem>>, vector<8x128xf32>,
    %c0_96 = arith.constant 0 : index
    %c0_97 = arith.constant 0 : index
    %302 = vector.load %arg10[%c0_96, %c0_97] : memref<8x128xf32, #tpu.memory_space<vmem>>, vector<8x128xf32>
    tpu.vector_store %arg10[%c0_96, %c0_97], %294 {strides = array<i32>} : memref<8x128xf32, #tpu.memory_space<vmem>>, vector<8x128xf32>,
    return
  }
  func.func @transform_0(%arg0: i32, %arg1: i32) -> (i32, i32, i32) {
    %c0_i32 = arith.constant 0 : i32
    %c0_i32_0 = arith.constant 0 : i32
    return %arg1, %arg0, %c0_i32 : i32, i32, i32
  }
  func.func @transform_1(%arg0: i32, %arg1: i32) -> (i32, i32) {
    %c0_i32 = arith.constant 0 : i32
    %c0_i32_0 = arith.constant 0 : i32
    %c0_i32_1 = arith.constant 0 : i32
    return %c0_i32, %c0_i32_0 : i32, i32
  }
  func.func @transform_2(%arg0: i32, %arg1: i32) -> (i32, i32) {
    %c0_i32 = arith.constant 0 : i32
    %c0_i32_0 = arith.constant 0 : i32
    %c0_i32_1 = arith.constant 0 : i32
    return %c0_i32, %c0_i32_0 : i32, i32
  }
  func.func @transform_3(%arg0: i32, %arg1: i32) -> (i32, i32) {
    %c0_i32 = arith.constant 0 : i32
    %c0_i32_0 = arith.constant 0 : i32
    %c0_i32_1 = arith.constant 0 : i32
    return %c0_i32, %c0_i32_0 : i32, i32
  }
  func.func @transform_4(%arg0: i32, %arg1: i32) -> (i32, i32) {
    %c0_i32 = arith.constant 0 : i32
    %c0_i32_0 = arith.constant 0 : i32
    return %arg0, %c0_i32 : i32, i32
  }
  func.func @transform_5(%arg0: i32, %arg1: i32) -> (i32, i32) {
    %c0_i32 = arith.constant 0 : i32
    %c0_i32_0 = arith.constant 0 : i32
    return %arg0, %c0_i32 : i32, i32
  }
  func.func @transform_6(%arg0: i32, %arg1: i32) -> (i32, i32, i32) {
    %c0_i32 = arith.constant 0 : i32
    %c0_i32_0 = arith.constant 0 : i32
    return %arg1, %arg0, %c0_i32 : i32, i32, i32
  }
  func.func @transform_7(%arg0: i32, %arg1: i32) -> (i32, i32) {
    %c0_i32 = arith.constant 0 : i32
    %c0_i32_0 = arith.constant 0 : i32
    return %arg0, %c0_i32 : i32, i32
  }
  func.func @transform_8(%arg0: i32, %arg1: i32) -> (i32, i32) {
    %c0_i32 = arith.constant 0 : i32
    %c0_i32_0 = arith.constant 0 : i32
    return %arg0, %c0_i32 : i32, i32
  }
}

</mosaic_0001>

<bundles_post_ra>
// kernel: tpu_custom_call.1
= control target key start
LH: loop header
LB: loop body
LE: loop exit
PB: predicated region body
PF: predicated region fallthrough
CT: control target
= control target key end

     0   :  { %14 = vsyncpa [#allocation4], 0  ;;  %s3763_s0 = inlined_call_operand.hbm [shape: f32[8,8,32], index: 0, kind: input, shape index: {}]   ;;  %s3764_s1 = inlined_call_operand.hbm [shape: f32[32,512], index: 1, kind: input, shape index: {}]   ;;  %s3765_s2 = inlined_call_operand.hbm [shape: f32[1,512], index: 2, kind: input, shape index: {}]   ;;  %s3766_s3 = inlined_call_operand.hbm [shape: f32[128,512], index: 3, kind: input, shape index: {}]   ;;  %s3767_s4 = inlined_call_operand.hbm [shape: f32[8,128], index: 4, kind: input, shape index: {}]   ;;  %s3768_s5 = inlined_call_operand.vmem [shape: f32[8,128], index: 5, kind: input, shape index: {}]   ;;  %s3769_s6 = inlined_call_operand.hbm [shape: f32[8,8,128], index: 6, kind: output, shape index: {0}]   ;;  %s3770_s7 = inlined_call_operand.hbm [shape: f32[8,128], index: 7, kind: output, shape index: {1}]   ;;  %s3771_s8 = inlined_call_operand.hbm [shape: f32[8,128], index: 8, kind: output, shape index: {2}]  }
   0x1   :  { %15 = vsyncpa [#allocation7], 0 }
   0x2   :  { %16 = vsyncpa [#allocation10], 0 }
   0x3   :  { %17 = vsyncpa [#allocation5], 0 }
   0x4   :  { %18 = vsyncpa [#allocation14], 0  ;;  %s2780_s27 = smov [#allocation6]  }
   0x5   :  { %s36_s28 = sshll.u32 %s2780_s27, 4  ;;  %s37_s28 = int_to_ptr.vmem [resolvable:$true] %s36_s28 }
   0x6   :  { %s2618_s29 = scalar_lea.vmem %s37_s28, 2048  ;;  %p2623_p1 = scmp.lt.s32.totalorder %s37_s28, %s37_s28 }
   0x7   :  { %p2619_p0 = scmp.ne.s32.totalorder %s37_s28, %s2618_s29  ;;  %p2624_p2 = scmp.lt.s32.totalorder %s2618_s29, %s2618_s29 }
   0x9   :  { %p2625_p3 = por %p2624_p2, %p2623_p1 }
   0xb   :  { %p2626_p4 = pnand %p2625_p3, %p2619_p0 }
   0xd   :  { %2629 = shalt.err (!%p2626_p4)
}
   0xe   :  { %s2781_s30 = smov 512   ;;  %s2782_s9 = smov 32  }
   0xf   :  { %42 = dma.hbm_to_vmem [thread:$0]  %s3764_s1, 2048, %s37_s28, [#allocation7], %s2781_s30, %s2781_s30, %s2782_s9  }
  0x10   :  { %s2783_s12 = smov [#allocation9]   ;;  %s2784_s14 = smov [#allocation3]  }
  0x11   :  { %s58_s13 = sshll.u32 %s2783_s12, 4  ;;  %s24_s15 = sshll.u32 %s2784_s14, 4  ;;  %s59_s13 = int_to_ptr.vmem [resolvable:$true] %s58_s13  ;;  %s25_s15 = int_to_ptr.vmem [resolvable:$true] %s24_s15 }
  0x12   :  { %s2638_s16 = scalar_lea.vmem %s59_s13, 8192  ;;  %p2643_p6 = scmp.lt.s32.totalorder %s59_s13, %s59_s13 }
  0x13   :  { %p2639_p5 = scmp.ne.s32.totalorder %s59_s13, %s2638_s16  ;;  %p2644_p7 = scmp.lt.s32.totalorder %s2638_s16, %s2638_s16 }
  0x15   :  { %p2645_p8 = por %p2644_p7, %p2643_p6 }
  0x17   :  { %p2646_p9 = pnand %p2645_p8, %p2639_p5 }
  0x19   :  { %2649 = shalt.err (!%p2646_p9)
}
  0x1a   :  { %64 = dma.hbm_to_vmem [thread:$0]  %s3766_s3, 8192, %s59_s13, [#allocation10], %s2781_s30, %s2781_s30, %s2782_s9  }
  0x1b   :  { %s2658_s19 = scalar_lea.vmem %s25_s15, 1024  ;;  %p2663_p11 = scmp.lt.s32.totalorder %s25_s15, %s25_s15 }
  0x1c   :  { %p2659_p10 = scmp.ne.s32.totalorder %s25_s15, %s2658_s19  ;;  %p2664_p12 = scmp.lt.s32.totalorder %s2658_s19, %s2658_s19 }
  0x1e   :  { %p2665_p13 = por %p2664_p12, %p2663_p11 }
  0x20   :  { %p2666_p0 = pnand %p2665_p13, %p2659_p10 }
  0x22   :  { %2669 = shalt.err (!%p2666_p0)
}
  0x23   :  { %s2785_s1 = smov 128   ;;  %s2786_s20 = smov 8  }
  0x24   :  { %30 = dma.hbm_to_vmem [thread:$0]  %s3763_s0, 1024, %s25_s15, [#allocation4], %s2785_s1, %s2785_s1, %s2786_s20  }
  0x25   :  { %s2787_s23 = smov [#allocation8]   ;;  %s2788_s3 = smov [#allocation11]  }
  0x26   :  { %s49_s24 = sshll.u32 %s2787_s23, 4  ;;  %s71_s25 = sshll.u32 %s2788_s3, 4  ;;  %s50_s24 = int_to_ptr.vmem [resolvable:$true] %s49_s24  ;;  %s72_s25 = int_to_ptr.vmem [resolvable:$true] %s71_s25 }
  0x27   :  { %s2678_s26 = scalar_lea.vmem %s50_s24, 64  ;;  %p2683_p2 = scmp.lt.s32.totalorder %s50_s24, %s50_s24 }
  0x28   :  { %p2679_p1 = scmp.ne.s32.totalorder %s50_s24, %s2678_s26  ;;  %p2684_p3 = scmp.lt.s32.totalorder %s2678_s26, %s2678_s26 }
  0x2a   :  { %p2685_p4 = por %p2684_p3, %p2683_p2 }
  0x2c   :  { %p2686_p5 = pnand %p2685_p4, %p2679_p1 }
  0x2e   :  { %2689 = shalt.err (!%p2686_p5)
}
  0x2f   :  { %52 = dma.hbm_to_vmem [thread:$0]  %s3765_s2, 64, %s50_s24, [#allocation7]  }
  0x30   :  { %s2698_s29 = scalar_lea.vmem %s72_s25, 128  ;;  %p2703_p7 = scmp.lt.s32.totalorder %s72_s25, %s72_s25 }
  0x31   :  { %p2699_p6 = scmp.ne.s32.totalorder %s72_s25, %s2698_s29  ;;  %p2704_p8 = scmp.lt.s32.totalorder %s2698_s29, %s2698_s29 }
  0x33   :  { %p2705_p9 = por %p2704_p8, %p2703_p7 }
  0x35   :  { %p2706_p10 = pnand %p2705_p9, %p2699_p6 }
  0x37   :  { %2709 = shalt.err (!%p2706_p10)
}
  0x38   :  { %74 = dma.hbm_to_vmem [thread:$0]  %s3767_s4, 128, %s72_s25, [#allocation10]  }
  0x39   :  { %2770 = dma.done.wait [#allocation4], 1024  }
  0x3a   :  { %2771 = vsyncadd [#allocation4], 4294966272 }
  0x3b   :  { %2772 = dma.done.wait [#allocation7], 2112  }
  0x3c   :  { %2773 = vsyncadd [#allocation7], 4294965184 }
  0x3d   :  { %2774 = dma.done.wait [#allocation10], 8320  }
  0x3e   :  { %2775 = vsyncadd [#allocation10], 4294958976  ;;  %v3772_v0 = vmov 0.0   ;;  %v121_v1 = vld [vmem:[#allocation6 + $0x68] sm:$0xff]  ;;  %v123_v2 = vld [vmem:[#allocation6 + $0x78] sm:$0xff]  ;;  %vm146_vm0 = vcmask 261120  }
  0x3f   :  { %235 = vmatprep.mubr.f32.mxu0 %v3772_v0  ;;  %348 = vmatprep.mubr.f32.mxu1 %v3772_v0  ;;  %v120_v3 = vld [vmem:[#allocation6 + $0x60] sm:$0xff]  ;;  %v122_v4 = vld [vmem:[#allocation6 + $0x70] sm:$0xff]  ;;  %v117_v5 = vld [vmem:[#allocation6 + $0x48] sm:$0xff]  ;;  %s2791_s10 = smov [#allocation12]   ;;  %s2792_s12 = smov [#allocation15]  }
  0x40   :  { %195 = vmatprep.subr.mxu0 %v121_v1  ;;  %308 = vmatprep.subr.mxu1 %v123_v2  ;;  %v119_v6 = vld [vmem:[#allocation6 + $0x58] sm:$0xff]  ;;  %v116_v7 = vld [vmem:[#allocation6 + $0x40] sm:$0xff]  ;;  %v118_v8 = vld [vmem:[#allocation6 + $0x50] sm:$0xff]  ;;  %s2381_s11 = sshll.u32 %s2791_s10, 4  ;;  %s2404_s13 = sshll.u32 %s2792_s12, 4  ;;  %s2382_s11 = int_to_ptr.vmem [resolvable:$true] %s2381_s11  ;;  %s2405_s13 = int_to_ptr.vmem [resolvable:$true] %s2404_s13 }
  0x41   :  { %196 = vmatpush1.msra.mxu0 %v120_v3  ;;  %309 = vmatpush1.msra.mxu1 %v122_v4  ;;  %v113_v9 = vld [vmem:[#allocation6 + $0x28] sm:$0xff]  ;;  %v115_v10 = vld [vmem:[#allocation6 + $0x38] sm:$0xff]  ;;  %v112_v11 = vld [vmem:[#allocation6 + $0x20] sm:$0xff] }
  0x42   :  { %197 = vmatprep.subr.mxu0 %v117_v5  ;;  %310 = vmatprep.subr.mxu1 %v119_v6  ;;  %v114_v12 = vld [vmem:[#allocation6 + $0x30] sm:$0xff]  ;;  %v109_v13 = vld [vmem:[#allocation6 + $0x8] sm:$0xff]  ;;  %v111_v14 = vld [vmem:[#allocation6 + $0x18] sm:$0xff] }
  0x43   :  { %198 = vmatpush1.msra.mxu0 %v116_v7  ;;  %311 = vmatpush1.msra.mxu1 %v118_v8  ;;  %v108_v15 = vld [vmem:[#allocation6] sm:$0xff]  ;;  %v110_v16 = vld [vmem:[#allocation6 + $0x10] sm:$0xff]  ;;  %v101_v26 = vld [vmem:[#allocation3 + $0x8] sm:$0xff] }
  0x44   :  { %199 = vmatprep.subr.mxu0 %v113_v9  ;;  %312 = vmatprep.subr.mxu1 %v115_v10  ;;  %v100_v17 = vld [vmem:[#allocation3] sm:$0xff]  ;;  %v2858_v18 = vld [vmem:[#allocation9 + $0x1e8] sm:$0xff]  ;;  %v2864_v21 = vld [vmem:[#allocation9 + $0x1f0] sm:$0xff] }
  0x45   :  { %200 = vmatpush1.msra.mxu0 %v112_v11  ;;  %313 = vmatpush1.msra.mxu1 %v114_v12  ;;  %v2860_v19 = vld [vmem:[#allocation9 + $0x1f8] sm:$0xff]  ;;  %v2862_v20 = vld [vmem:[#allocation9 + $0x1e0] sm:$0xff]  ;;  %v2868_v22 = vld [vmem:[#allocation9 + $0x1c8] sm:$0xff] }
  0x46   :  { %201 = vmatprep.subr.mxu0 %v109_v13  ;;  %314 = vmatprep.subr.mxu1 %v111_v14  ;;  %v2870_v23 = vld [vmem:[#allocation9 + $0x1d8] sm:$0xff]  ;;  %v2876_v24 = vld [vmem:[#allocation9 + $0x1c0] sm:$0xff]  ;;  %v2878_v25 = vld [vmem:[#allocation9 + $0x1d0] sm:$0xff] }
  0x47   :  { %202 = vmatpush1.msra.mxu0 %v108_v15  ;;  %315 = vmatpush1.msra.mxu1 %v110_v16  ;;  %v2884_v27 = vld [vmem:[#allocation9 + $0x1a8] sm:$0xff]  ;;  %v2886_v28 = vld [vmem:[#allocation9 + $0x1b8] sm:$0xff]  ;;  %v2890_v29 = vld [vmem:[#allocation9 + $0x1a0] sm:$0xff] }
  0x48   :  { %2429 = vmatmul.mubr.msk.f32.vlgmr.msra.gmra.mxu0 %vm146_vm0, %v100_v17  ;;  %2437 = vmatmul.mubr.msk.f32.vlgmr.msra.gmra.mxu1 %vm146_vm0, %v100_v17  ;;  %v2892_v30 = vld [vmem:[#allocation9 + $0x1b0] sm:$0xff]  ;;  %v2896_v31 = vld [vmem:[#allocation9 + $0x188] sm:$0xff]  ;;  %v2898_v32 = vld [vmem:[#allocation9 + $0x198] sm:$0xff] }
  0x49   :  { %502 = vmatprep.subr.mxu0 %v2858_v18  ;;  %573 = vmatprep.subr.mxu1 %v2860_v19  ;;  %v2904_v33 = vld [vmem:[#allocation9 + $0x180] sm:$0xff]  ;;  %v2906_v34 = vld [vmem:[#allocation9 + $0x190] sm:$0xff]  ;;  %v2912_v36 = vld [vmem:[#allocation9 + $0x168] sm:$0xff] }
  0x4a   :  { %503 = vmatpush1.msra.mxu0 %v2862_v20  ;;  %574 = vmatpush1.msra.mxu1 %v2864_v21  ;;  %v102_v35 = vld [vmem:[#allocation3 + $0x10] sm:$0xff]  ;;  %v2914_v37 = vld [vmem:[#allocation9 + $0x178] sm:$0xff]  ;;  %v2918_v38 = vld [vmem:[#allocation9 + $0x160] sm:$0xff] }
  0x4b   :  { %504 = vmatprep.subr.mxu0 %v2868_v22  ;;  %575 = vmatprep.subr.mxu1 %v2870_v23  ;;  %v2920_v39 = vld [vmem:[#allocation9 + $0x170] sm:$0xff]  ;;  %v2924_v40 = vld [vmem:[#allocation9 + $0x148] sm:$0xff]  ;;  %v2926_v41 = vld [vmem:[#allocation9 + $0x158] sm:$0xff] }
  0x4c   :  { %241 = vmatprep.mubr.f32.mxu0 %v3772_v0  ;;  %354 = vmatprep.mubr.f32.mxu1 %v3772_v0  ;;  %v2932_v42 = vld [vmem:[#allocation9 + $0x140] sm:$0xff]  ;;  %v2934_v43 = vld [vmem:[#allocation9 + $0x150] sm:$0xff]  ;;  %v2940_v45 = vld [vmem:[#allocation9 + $0x128] sm:$0xff] }
  0x4d   :  { %505 = vmatpush1.msra.mxu0 %v2876_v24  ;;  %576 = vmatpush1.msra.mxu1 %v2878_v25  ;;  %v103_v44 = vld [vmem:[#allocation3 + $0x18] sm:$0xff]  ;;  %v2946_v47 = vld [vmem:[#allocation9 + $0x120] sm:$0xff]  ;;  %v2952_v49 = vld [vmem:[#allocation9 + $0x108] sm:$0xff] }
  0x4e   :  { %2430 = vmatmul.mubr.msk.f32.gmra.mxu0 %vm146_vm0, %v101_v26  ;;  %2438 = vmatmul.mubr.msk.f32.gmra.mxu1 %vm146_vm0, %v101_v26  ;;  %v2942_v46 = vld [vmem:[#allocation9 + $0x138] sm:$0xff]  ;;  %v2948_v48 = vld [vmem:[#allocation9 + $0x130] sm:$0xff]  ;;  %v2960_v51 = vld [vmem:[#allocation9 + $0x100] sm:$0xff] }
  0x4f   :  { %506 = vmatprep.subr.mxu0 %v2884_v27  ;;  %577 = vmatprep.subr.mxu1 %v2886_v28  ;;  %v2954_v50 = vld [vmem:[#allocation9 + $0x118] sm:$0xff]  ;;  %v2962_v52 = vld [vmem:[#allocation9 + $0x110] sm:$0xff]  ;;  %v2968_v54 = vld [vmem:[#allocation9 + $0xe8] sm:$0xff] }
  0x50   :  { %507 = vmatpush1.msra.mxu0 %v2890_v29  ;;  %578 = vmatpush1.msra.mxu1 %v2892_v30  ;;  %v104_v53 = vld [vmem:[#allocation3 + $0x20] sm:$0xff]  ;;  %v2976_v57 = vld [vmem:[#allocation9 + $0xf0] sm:$0xff]  ;;  %v2980_v58 = vld [vmem:[#allocation9 + $0xc8] sm:$0xff] }
  0x51   :  { %508 = vmatprep.subr.mxu0 %v2896_v31  ;;  %579 = vmatprep.subr.mxu1 %v2898_v32  ;;  %v2970_v55 = vld [vmem:[#allocation9 + $0xf8] sm:$0xff]  ;;  %v2974_v56 = vld [vmem:[#allocation9 + $0xe0] sm:$0xff]  ;;  %v2990_v61 = vld [vmem:[#allocation9 + $0xd0] sm:$0xff] }
  0x52   :  { %247 = vmatprep.mubr.f32.mxu0 %v3772_v0  ;;  %360 = vmatprep.mubr.f32.mxu1 %v3772_v0  ;;  %v2982_v59 = vld [vmem:[#allocation9 + $0xd8] sm:$0xff]  ;;  %v2988_v60 = vld [vmem:[#allocation9 + $0xc0] sm:$0xff]  ;;  %v2996_v63 = vld [vmem:[#allocation9 + $0xa8] sm:$0xff] }
  0x53   :  { %509 = vmatpush1.msra.mxu0 %v2904_v33  ;;  %580 = vmatpush1.msra.mxu1 %v2906_v34  ;;  %v105_v62 = vld [vmem:[#allocation3 + $0x28] sm:$0xff]  ;;  %v2998_v1 = vld [vmem:[#allocation9 + $0xb8] sm:$0xff]  ;;  %v3004_v3 = vld [vmem:[#allocation9 + $0xb0] sm:$0xff] }
  0x54   :  { %2431 = vmatmul.mubr.msk.f32.gmra.mxu0 %vm146_vm0, %v102_v35  ;;  %2439 = vmatmul.mubr.msk.f32.gmra.mxu1 %vm146_vm0, %v102_v35  ;;  %v3002_v2 = vld [vmem:[#allocation9 + $0xa0] sm:$0xff]  ;;  %v3008_v4 = vld [vmem:[#allocation9 + $0x88] sm:$0xff]  ;;  %v3010_v5 = vld [vmem:[#allocation9 + $0x98] sm:$0xff] }
  0x55   :  { %510 = vmatprep.subr.mxu0 %v2912_v36  ;;  %581 = vmatprep.subr.mxu1 %v2914_v37  ;;  %3838 = vst [vmem:[#allocation21_spill] sm:$0xff] %v3008_v4  ;;  %3839 = vst [vmem:[#allocation22_spill] sm:$0xff] %v3010_v5  ;;  %v3016_v6 = vld [vmem:[#allocation9 + $0x80] sm:$0xff]  ;;  %v3018_v7 = vld [vmem:[#allocation9 + $0x90] sm:$0xff] }
  0x56   :  { %511 = vmatpush1.msra.mxu0 %v2918_v38  ;;  %582 = vmatpush1.msra.mxu1 %v2920_v39  ;;  %3840 = vst [vmem:[#allocation23_spill] sm:$0xff] %v3016_v6  ;;  %3841 = vst [vmem:[#allocation24_spill] sm:$0xff] %v3018_v7  ;;  %v106_v8 = vld [vmem:[#allocation3 + $0x30] sm:$0xff]  ;;  %v3026_v10 = vld [vmem:[#allocation9 + $0x78] sm:$0xff] }
  0x57   :  { %512 = vmatprep.subr.mxu0 %v2924_v40  ;;  %583 = vmatprep.subr.mxu1 %v2926_v41  ;;  %v3024_v9 = vld [vmem:[#allocation9 + $0x68] sm:$0xff]  ;;  %3843 = vst [vmem:[#allocation26_spill] sm:$0xff] %v3026_v10  ;;  %v3030_v11 = vld [vmem:[#allocation9 + $0x60] sm:$0xff]  ;;  %v3032_v12 = vld [vmem:[#allocation9 + $0x70] sm:$0xff] }
  0x58   :  { %253 = vmatprep.mubr.f32.mxu0 %v3772_v0  ;;  %366 = vmatprep.mubr.f32.mxu1 %v3772_v0  ;;  %3842 = vst [vmem:[#allocation25_spill] sm:$0xff] %v3024_v9  ;;  %3844 = vst [vmem:[#allocation27_spill] sm:$0xff] %v3030_v11  ;;  %v3036_v13 = vld [vmem:[#allocation9 + $0x48] sm:$0xff]  ;;  %v3038_v14 = vld [vmem:[#allocation9 + $0x58] sm:$0xff] }
  0x59   :  { %513 = vmatpush1.msra.mxu0 %v2932_v42  ;;  %584 = vmatpush1.msra.mxu1 %v2934_v43  ;;  %3845 = vst [vmem:[#allocation28_spill] sm:$0xff] %v3032_v12  ;;  %3846 = vst [vmem:[#allocation29_spill] sm:$0xff] %v3036_v13  ;;  %v3044_v15 = vld [vmem:[#allocation9 + $0x40] sm:$0xff]  ;;  %v3046_v16 = vld [vmem:[#allocation9 + $0x50] sm:$0xff] }
  0x5a   :  { %2432 = vmatmul.mubr.msk.f32.gmra.mxu0 %vm146_vm0, %v103_v44  ;;  %2440 = vmatmul.mubr.msk.f32.gmra.mxu1 %vm146_vm0, %v103_v44  ;;  %3847 = vst [vmem:[#allocation30_spill] sm:$0xff] %v3038_v14  ;;  %3848 = vst [vmem:[#allocation31_spill] sm:$0xff] %v3044_v15  ;;  %v107_v17 = vld [vmem:[#allocation3 + $0x38] sm:$0xff]  ;;  %v3052_v26 = vld [vmem:[#allocation9 + $0x28] sm:$0xff] }
  0x5b   :  { %514 = vmatprep.subr.mxu0 %v2940_v45  ;;  %585 = vmatprep.subr.mxu1 %v2942_v46  ;;  %3849 = vst [vmem:[#allocation32_spill] sm:$0xff] %v3046_v16  ;;  %3850 = vst [vmem:[#allocation33_spill] sm:$0xff] %v3052_v26  ;;  %v3054_v35 = vld [vmem:[#allocation9 + $0x38] sm:$0xff]  ;;  %v3058_v44 = vld [vmem:[#allocation9 + $0x20] sm:$0xff] }
  0x5c   :  { %515 = vmatpush1.msra.mxu0 %v2946_v47  ;;  %586 = vmatpush1.msra.mxu1 %v2948_v48  ;;  %3851 = vst [vmem:[#allocation34_spill] sm:$0xff] %v3054_v35  ;;  %3852 = vst [vmem:[#allocation35_spill] sm:$0xff] %v3058_v44 }
  0x5d   :  { %516 = vmatprep.subr.mxu0 %v2952_v49  ;;  %587 = vmatprep.subr.mxu1 %v2954_v50 }
  0x5e   :  { %259 = vmatprep.mubr.f32.mxu0 %v3772_v0  ;;  %372 = vmatprep.mubr.f32.mxu1 %v3772_v0 }
  0x5f   :  { %517 = vmatpush1.msra.mxu0 %v2960_v51  ;;  %588 = vmatpush1.msra.mxu1 %v2962_v52 }
  0x60   :  { %2433 = vmatmul.mubr.msk.f32.gmra.mxu0 %vm146_vm0, %v104_v53  ;;  %2441 = vmatmul.mubr.msk.f32.gmra.mxu1 %vm146_vm0, %v104_v53  ;;  %v3060_v53 = vld [vmem:[#allocation9 + $0x30] sm:$0xff] }
  0x61   :  { %518 = vmatprep.subr.mxu0 %v2968_v54  ;;  %589 = vmatprep.subr.mxu1 %v2970_v55  ;;  %3853 = vst [vmem:[#allocation36_spill] sm:$0xff] %v3060_v53 }
  0x62   :  { %519 = vmatpush1.msra.mxu0 %v2974_v56  ;;  %590 = vmatpush1.msra.mxu1 %v2976_v57 }
  0x63   :  { %520 = vmatprep.subr.mxu0 %v2980_v58  ;;  %591 = vmatprep.subr.mxu1 %v2982_v59 }
  0x64   :  { %265 = vmatprep.mubr.f32.mxu0 %v3772_v0  ;;  %378 = vmatprep.mubr.f32.mxu1 %v3772_v0 }
  0x65   :  { %521 = vmatpush1.msra.mxu0 %v2988_v60  ;;  %592 = vmatpush1.msra.mxu1 %v2990_v61 }
  0x66   :  { %2434 = vmatmul.mubr.msk.f32.gmra.mxu0 %vm146_vm0, %v105_v62  ;;  %2442 = vmatmul.mubr.msk.f32.gmra.mxu1 %vm146_vm0, %v105_v62  ;;  %v3064_v62 = vld [vmem:[#allocation9 + $0x8] sm:$0xff] }
  0x67   :  { %522 = vmatprep.subr.mxu0 %v2996_v63  ;;  %593 = vmatprep.subr.mxu1 %v2998_v1  ;;  %3854 = vst [vmem:[#allocation37_spill] sm:$0xff] %v3064_v62 }
  0x68   :  { %523 = vmatpush1.msra.mxu0 %v3002_v2  ;;  %594 = vmatpush1.msra.mxu1 %v3004_v3 }
  0x69   :  { %524 = vmatprep.subr.mxu0 %v3008_v4  ;;  %595 = vmatprep.subr.mxu1 %v3010_v5 }
  0x6a   :  { %271 = vmatprep.mubr.f32.mxu0 %v3772_v0  ;;  %384 = vmatprep.mubr.f32.mxu1 %v3772_v0 }
  0x6b   :  { %525 = vmatpush1.msra.mxu0 %v3016_v6  ;;  %596 = vmatpush1.msra.mxu1 %v3018_v7 }
  0x6c   :  { %2435 = vmatmul.mubr.msk.f32.gmra.mxu0 %vm146_vm0, %v106_v8  ;;  %2443 = vmatmul.mubr.msk.f32.gmra.mxu1 %vm146_vm0, %v106_v8  ;;  %v3066_v8 = vld [vmem:[#allocation9 + $0x18] sm:$0xff] }
  0x6d   :  { %526 = vmatprep.subr.mxu0 %v3024_v9  ;;  %597 = vmatprep.subr.mxu1 %v3026_v10  ;;  %3855 = vst [vmem:[#allocation38_spill] sm:$0xff] %v3066_v8 }
  0x6e   :  { %527 = vmatpush1.msra.mxu0 %v3030_v11  ;;  %598 = vmatpush1.msra.mxu1 %v3032_v12 }
  0x6f   :  { %528 = vmatprep.subr.mxu0 %v3036_v13  ;;  %599 = vmatprep.subr.mxu1 %v3038_v14 }
  0x70   :  { %277 = vmatprep.mubr.f32.mxu0 %v3772_v0  ;;  %390 = vmatprep.mubr.f32.mxu1 %v3772_v0  ;;  %v3070_v0 = vld [vmem:[#allocation9] sm:$0xff] }
  0x71   :  { %529 = vmatpush1.msra.mxu0 %v3044_v15  ;;  %600 = vmatpush1.msra.mxu1 %v3046_v16  ;;  %3856 = vst [vmem:[#allocation39_spill] sm:$0xff] %v3070_v0  ;;  %v3074_v16 = vld [vmem:[#allocation9 + $0x10] sm:$0xff]  ;;  %v3858_v15 = vmov 0.0  }
  0x72   :  { %2436 = vmatmul.mubr.msk.f32.gmra.mxu0 %vm146_vm0, %v107_v17  ;;  %2444 = vmatmul.mubr.msk.f32.gmra.mxu1 %vm146_vm0, %v107_v17  ;;  %3857 = vst [vmem:[#allocation40_spill] sm:$0xff] %v3074_v16  ;;  %v96_v17 = vld [vmem:[#allocation11] sm:$0xff] }
  0x73   :  { %530 = vmatprep.subr.mxu0 %v3052_v26  ;;  %601 = vmatprep.subr.mxu1 %v3054_v35 }
  0x74   :  { %531 = vmatpush1.msra.mxu0 %v3058_v44  ;;  %602 = vmatpush1.msra.mxu1 %v3060_v53 }
  0x75   :  { %532 = vmatprep.subr.mxu0 %v3064_v62  ;;  %603 = vmatprep.subr.mxu1 %v3066_v8 }
  0x76   :  { %533 = vmatpush1.msra.mxu0 %v3070_v0  ;;  %566 = vmatprep.mubr.f32.mxu0 %v3858_v15 }
  0x77   :  { %604 = vmatpush1.msra.mxu1 %v3074_v16  ;;  %637 = vmatprep.mubr.f32.mxu1 %v3858_v15 }
  0x78   :  { %567 = vmatmul.mubr.f32.vlgmr.msra.gmra.mxu0 %v96_v17  ;;  %638 = vmatmul.mubr.f32.vlgmr.msra.gmra.mxu1 %v96_v17  ;;  %v3859_v17 = vld [vmem:[#allocation31_spill] sm:$0xff] }
  0x79   :  { %744 = vmatprep.subr.mxu0 %v2858_v18  ;;  %815 = vmatprep.subr.mxu1 %v2860_v19 }
  0x7a   :  { %745 = vmatpush1.msra.mxu0 %v2862_v20  ;;  %816 = vmatpush1.msra.mxu1 %v2864_v21 }
  0x7b   :  { %746 = vmatprep.subr.mxu0 %v2868_v22  ;;  %817 = vmatprep.subr.mxu1 %v2870_v23 }
  0x7c   :  { %747 = vmatpush1.msra.mxu0 %v2876_v24  ;;  %818 = vmatpush1.msra.mxu1 %v2878_v25 }
  0x7d   :  { %748 = vmatprep.subr.mxu0 %v2884_v27  ;;  %819 = vmatprep.subr.mxu1 %v2886_v28 }
  0x7e   :  { %749 = vmatpush1.msra.mxu0 %v2890_v29  ;;  %820 = vmatpush1.msra.mxu1 %v2892_v30 }
  0x7f   :  { %750 = vmatprep.subr.mxu0 %v2896_v31  ;;  %821 = vmatprep.subr.mxu1 %v2898_v32 }
  0x80   :  { %751 = vmatpush1.msra.mxu0 %v2904_v33  ;;  %822 = vmatpush1.msra.mxu1 %v2906_v34 }
  0x81   :  { %752 = vmatprep.subr.mxu0 %v2912_v36  ;;  %823 = vmatprep.subr.mxu1 %v2914_v37 }
  0x82   :  { %753 = vmatpush1.msra.mxu0 %v2918_v38  ;;  %824 = vmatpush1.msra.mxu1 %v2920_v39 }
  0x83   :  { %754 = vmatprep.subr.mxu0 %v2924_v40  ;;  %825 = vmatprep.subr.mxu1 %v2926_v41 }
  0x84   :  { %755 = vmatpush1.msra.mxu0 %v2932_v42  ;;  %826 = vmatpush1.msra.mxu1 %v2934_v43 }
  0x85   :  { %756 = vmatprep.subr.mxu0 %v2940_v45  ;;  %827 = vmatprep.subr.mxu1 %v2942_v46 }
  0x86   :  { %757 = vmatpush1.msra.mxu0 %v2946_v47  ;;  %828 = vmatpush1.msra.mxu1 %v2948_v48 }
  0x87   :  { %758 = vmatprep.subr.mxu0 %v2952_v49  ;;  %829 = vmatprep.subr.mxu1 %v2954_v50 }
  0x88   :  { %759 = vmatpush1.msra.mxu0 %v2960_v51  ;;  %830 = vmatpush1.msra.mxu1 %v2962_v52 }
  0x89   :  { %760 = vmatprep.subr.mxu0 %v2968_v54  ;;  %831 = vmatprep.subr.mxu1 %v2970_v55 }
  0x8a   :  { %761 = vmatpush1.msra.mxu0 %v2974_v56  ;;  %832 = vmatpush1.msra.mxu1 %v2976_v57 }
  0x8b   :  { %762 = vmatprep.subr.mxu0 %v2980_v58  ;;  %833 = vmatprep.subr.mxu1 %v2982_v59 }
  0x8c   :  { %763 = vmatpush1.msra.mxu0 %v2988_v60  ;;  %834 = vmatpush1.msra.mxu1 %v2990_v61 }
  0x8d   :  { %764 = vmatprep.subr.mxu0 %v2996_v63  ;;  %835 = vmatprep.subr.mxu1 %v2998_v1 }
  0x8e   :  { %765 = vmatpush1.msra.mxu0 %v3002_v2  ;;  %836 = vmatpush1.msra.mxu1 %v3004_v3 }
  0x8f   :  { %766 = vmatprep.subr.mxu0 %v3008_v4  ;;  %837 = vmatprep.subr.mxu1 %v3010_v5  ;;  %v3860_v4 = vld [vmem:[#allocation32_spill] sm:$0xff] }
  0x90   :  { %767 = vmatpush1.msra.mxu0 %v3016_v6  ;;  %838 = vmatpush1.msra.mxu1 %v3018_v7 }
  0x91   :  { %768 = vmatprep.subr.mxu0 %v3024_v9  ;;  %839 = vmatprep.subr.mxu1 %v3026_v10 }
  0x92   :  { %769 = vmatpush1.msra.mxu0 %v3030_v11  ;;  %840 = vmatpush1.msra.mxu1 %v3032_v12 }
  0x93   :  { %770 = vmatprep.subr.mxu0 %v3036_v13  ;;  %841 = vmatprep.subr.mxu1 %v3038_v14 }
  0x94   :  { %771 = vmatpush1.msra.mxu0 %v3859_v17  ;;  %842 = vmatpush1.msra.mxu1 %v3860_v4  ;;  %v124_v4 = vld [vmem:[#allocation8] sm:$0xf] }
  0x95   :  { %772 = vmatprep.subr.mxu0 %v3052_v26  ;;  %843 = vmatprep.subr.mxu1 %v3054_v35  ;;  %v126_v35 = vlaneseq }
  0x96   :  { %773 = vmatpush1.msra.mxu0 %v3058_v44  ;;  %844 = vmatpush1.msra.mxu1 %v3060_v53 }
  0x97   :  { %774 = vmatprep.subr.mxu0 %v3064_v62  ;;  %845 = vmatprep.subr.mxu1 %v3066_v8  ;;  %v127_v44 = vshrl.u32 %v126_v35, 7 }
  0x98   :  { %775 = vmatpush1.msra.mxu0 %v3070_v0  ;;  %808 = vmatprep.mubr.f32.mxu0 %v3858_v15 }
  0x99   :  { %846 = vmatpush1.msra.mxu1 %v3074_v16  ;;  %879 = vmatprep.mubr.f32.mxu1 %v3858_v15  ;;  %v128_v62 = vsub.s32 0, %v127_v44  ;;  %v136_v8 = vsub.s32 2, %v127_v44  ;;  %v132_v16 = vsub.s32 1, %v127_v44  ;;  %v140_v14 = vsub.s32 3, %v127_v44 }
  0x9a   :  { %987 = vmatprep.subr.mxu0 %v2858_v18  ;;  %1058 = vmatprep.subr.mxu1 %v2860_v19 }
  0x9b   :  { %v129_v15 = vrot.slane %v124_v4, %v128_v62  ;;  %v3158_v13 = vrot.slane %v124_v4, %v136_v8  ;;  %v133_v12 = vrot.slane %v124_v4, %v132_v16  ;;  %v3160_v35 = vrot.slane %v124_v4, %v140_v14 }
 0x108   :  { %v3150_v26 = vpop.f32.mrf.mxu0  ;;  %v3152_v53 = vpop.f32.mrf.mxu1 }
 0x10a   :  { %v3154_v0 = vpop.f32.mrf.mxu0  ;;  %v3156_v17 = vpop.f32.mrf.mxu1 }
 0x10e   :  { %v243_v18 = vpop.f32.mrf.mxu0  ;;  %v356_v19 = vpop.f32.mrf.mxu1 }
 0x10f   :  { %v3162_v11 = vadd.f32 %v243_v18, %v129_v15  ;;  %v3165_v10 = vadd.f32 %v356_v19, %v3158_v13 }
 0x110   :  { %v245_v9 = vpop.f32.mrf.mxu0  ;;  %v358_v7 = vpop.f32.mrf.mxu1 }
 0x111   :  { %3861 = vst [vmem:[#allocation41_spill] sm:$0xff] %v3162_v11  ;;  %3862 = vst [vmem:[#allocation42_spill] sm:$0xff] %v3165_v10  ;;  %v3167_v6 = vadd.f32 %v245_v9, %v133_v12  ;;  %v3170_v5 = vadd.f32 %v358_v7, %v3160_v35 }
 0x113   :  { %3863 = vst [vmem:[#allocation43_spill] sm:$0xff] %v3167_v6  ;;  %3864 = vst [vmem:[#allocation44_spill] sm:$0xff] %v3170_v5 }
 0x114   :  { %v249_v44 = vpop.f32.mrf.mxu0  ;;  %v362_v62 = vpop.f32.mrf.mxu1 }
 0x115   :  { %v3172_v8 = vadd.f32 %v249_v44, %v129_v15  ;;  %v3175_v16 = vadd.f32 %v362_v62, %v3158_v13 }
 0x116   :  { %v251_v4 = vpop.f32.mrf.mxu0  ;;  %v364_v14 = vpop.f32.mrf.mxu1 }
 0x117   :  { %3865 = vst [vmem:[#allocation45_spill] sm:$0xff] %v3172_v8  ;;  %3866 = vst [vmem:[#allocation46_spill] sm:$0xff] %v3175_v16  ;;  %v3177_v18 = vadd.f32 %v251_v4, %v133_v12  ;;  %v3180_v19 = vadd.f32 %v364_v14, %v3160_v35 }
 0x119   :  { %3867 = vst [vmem:[#allocation47_spill] sm:$0xff] %v3177_v18  ;;  %3868 = vst [vmem:[#allocation48_spill] sm:$0xff] %v3180_v19 }
 0x11a   :  { %v255_v10 = vpop.f32.mrf.mxu0  ;;  %v368_v9 = vpop.f32.mrf.mxu1 }
 0x11b   :  { %v3182_v6 = vadd.f32 %v255_v10, %v129_v15  ;;  %v3185_v7 = vadd.f32 %v368_v9, %v3158_v13 }
 0x11c   :  { %v257_v5 = vpop.f32.mrf.mxu0  ;;  %v370_v44 = vpop.f32.mrf.mxu1 }
 0x11d   :  { %3869 = vst [vmem:[#allocation49_spill] sm:$0xff] %v3182_v6  ;;  %3870 = vst [vmem:[#allocation50_spill] sm:$0xff] %v3185_v7  ;;  %v3187_v8 = vadd.f32 %v257_v5, %v133_v12  ;;  %v3190_v62 = vadd.f32 %v370_v44, %v3160_v35 }
 0x11f   :  { %3871 = vst [vmem:[#allocation51_spill] sm:$0xff] %v3187_v8  ;;  %3872 = vst [vmem:[#allocation52_spill] sm:$0xff] %v3190_v62 }
 0x120   :  { %v261_v16 = vpop.f32.mrf.mxu0  ;;  %v374_v4 = vpop.f32.mrf.mxu1 }
 0x121   :  { %v3192_v18 = vadd.f32 %v261_v16, %v129_v15  ;;  %v3195_v14 = vadd.f32 %v374_v4, %v3158_v13 }
 0x122   :  { %v263_v19 = vpop.f32.mrf.mxu0  ;;  %v376_v10 = vpop.f32.mrf.mxu1 }
 0x123   :  { %3873 = vst [vmem:[#allocation53_spill] sm:$0xff] %v3192_v18  ;;  %3874 = vst [vmem:[#allocation54_spill] sm:$0xff] %v3195_v14  ;;  %v3197_v6 = vadd.f32 %v263_v19, %v133_v12  ;;  %v3200_v9 = vadd.f32 %v376_v10, %v3160_v35 }
 0x125   :  { %3875 = vst [vmem:[#allocation55_spill] sm:$0xff] %v3197_v6  ;;  %3876 = vst [vmem:[#allocation56_spill] sm:$0xff] %v3200_v9 }
 0x126   :  { %v267_v7 = vpop.f32.mrf.mxu0  ;;  %v380_v5 = vpop.f32.mrf.mxu1 }
 0x127   :  { %v3202_v8 = vadd.f32 %v267_v7, %v129_v15  ;;  %v3205_v44 = vadd.f32 %v380_v5, %v3158_v13 }
 0x128   :  { %v269_v62 = vpop.f32.mrf.mxu0  ;;  %v382_v16 = vpop.f32.mrf.mxu1 }
 0x129   :  { %3877 = vst [vmem:[#allocation57_spill] sm:$0xff] %v3202_v8  ;;  %3878 = vst [vmem:[#allocation58_spill] sm:$0xff] %v3205_v44  ;;  %v3207_v18 = vadd.f32 %v269_v62, %v133_v12  ;;  %v3210_v4 = vadd.f32 %v382_v16, %v3160_v35 }
 0x12b   :  { %3879 = vst [vmem:[#allocation59_spill] sm:$0xff] %v3207_v18  ;;  %3880 = vst [vmem:[#allocation60_spill] sm:$0xff] %v3210_v4 }
 0x12c   :  { %v273_v14 = vpop.f32.mrf.mxu0  ;;  %v386_v19 = vpop.f32.mrf.mxu1 }
 0x12d   :  { %v3212_v6 = vadd.f32 %v273_v14, %v129_v15  ;;  %v3215_v10 = vadd.f32 %v386_v19, %v3158_v13 }
 0x12e   :  { %v275_v9 = vpop.f32.mrf.mxu0  ;;  %v388_v7 = vpop.f32.mrf.mxu1 }
 0x12f   :  { %3881 = vst [vmem:[#allocation61_spill] sm:$0xff] %v3212_v6  ;;  %3882 = vst [vmem:[#allocation62_spill] sm:$0xff] %v3215_v10  ;;  %v3217_v8 = vadd.f32 %v275_v9, %v133_v12  ;;  %v3220_v5 = vadd.f32 %v388_v7, %v3160_v35  ;;  %v238_v9 = vadd.f32 %v3150_v26, %v129_v15 }
 0x130   :  { %v240_v7 = vadd.f32 %v3154_v0, %v133_v12 }
 0x131   :  { %3883 = vst [vmem:[#allocation63_spill] sm:$0xff] %v3217_v8  ;;  %3884 = vst [vmem:[#allocation64_spill] sm:$0xff] %v3220_v5 }
 0x132   :  { %v279_v44 = vpop.f32.mrf.mxu0  ;;  %v392_v62 = vpop.f32.mrf.mxu1 }
 0x133   :  { %v3222_v18 = vadd.f32 %v279_v44, %v129_v15  ;;  %v3225_v16 = vadd.f32 %v392_v62, %v3158_v13 }
 0x134   :  { %v281_v4 = vpop.f32.mrf.mxu0  ;;  %v394_v14 = vpop.f32.mrf.mxu1 }
 0x135   :  { %3885 = vst [vmem:[#allocation65_spill] sm:$0xff] %v3222_v18  ;;  %3886 = vst [vmem:[#allocation66_spill] sm:$0xff] %v3225_v16  ;;  %v3227_v6 = vadd.f32 %v281_v4, %v133_v12  ;;  %v3230_v19 = vadd.f32 %v394_v14, %v3160_v35  ;;  %v353_v4 = vadd.f32 %v3156_v17, %v3160_v35  ;;  %v98_v17 = vld [vmem:[%s3768_s5] sm:$0xff]  ;;  %s2790_s5 = smov [#allocation13]  }
 0x136   :  { %v351_v14 = vadd.f32 %v3152_v53, %v3158_v13  ;;  %s2394_s9 = sshll.u32 %s2790_s5, 4  ;;  %s2395_s9 = int_to_ptr.vmem [resolvable:$true] %s2394_s9 }
 0x137   :  { %3887 = vst [vmem:[#allocation67_spill] sm:$0xff] %v3227_v6  ;;  %3888 = vst [vmem:[#allocation68_spill] sm:$0xff] %v3230_v19  ;;  %s2710_s14 = scalar_lea.vmem %s2395_s9, 128  ;;  %p2715_p12 = scmp.lt.s32.totalorder %s2395_s9, %s2395_s9 }
 0x138   :  { %v568_v10 = vpop.f32.mrf.mxu0  ;;  %v639_v18 = vpop.f32.mrf.mxu1  ;;  %p2711_p11 = scmp.ne.s32.totalorder %s2395_s9, %s2710_s14  ;;  %p2716_p13 = scmp.lt.s32.totalorder %s2710_s14, %s2710_s14 }
 0x139   :  { %v644_v5 = vadd.f32 %v568_v10, %v238_v9  ;;  %v646_v19 = vadd.f32 %v639_v18, %v351_v14 }
 0x13a   :  { %v570_v8 = vpop.f32.mrf.mxu0  ;;  %v641_v16 = vpop.f32.mrf.mxu1  ;;  %p2717_p0 = por %p2716_p13, %p2715_p12 }
 0x13b   :  { %v2445_v11 = vmul.f32 -1.442695, %v644_v5  ;;  %v645_v44 = vadd.f32 %v570_v8, %v240_v7  ;;  %v647_v6 = vadd.f32 %v641_v16, %v353_v4 }
 0x13c   :  { %p2718_p1 = pnand %p2717_p0, %p2711_p11 }
 0x13d   :  { %2482 = vpow2.f32 %v2445_v11  ;;  %v2446_v62 = vmul.f32 -1.442695, %v645_v44  ;;  %v2447_v15 = vmul.f32 -1.442695, %v647_v6 }
 0x13f   :  { %2484 = vpow2.f32 %v2446_v62 }
 0x140   :  { %2486 = vpow2.f32 %v2447_v15 }
 0x14a   :  { %v2483_v26 = vpop.eup %2482 }
 0x14b   :  { %v651_v0 = vadd.f32 1.0, %v2483_v26 }
 0x14c   :  { %v2485_v12 = vpop.eup %2484 }
 0x14d   :  { %2488 = vrcp.f32 %v651_v0  ;;  %v657_v8 = vadd.f32 1.0, %v2485_v12  ;;  %v2487_v11 = vpop.eup %2486 }
 0x14e   :  { %2490 = vtanh.f32 %v646_v19  ;;  %v664_v16 = vadd.f32 1.0, %v2487_v11  ;;  %v3320_v11 = vld [vmem:[#allocation9 + $0x1f8] sm:$0xff] }
 0x14f   :  { %2492 = vrcp.f32 %v657_v8  ;;  %v3318_v8 = vld [vmem:[#allocation9 + $0x1e8] sm:$0xff] }
 0x150   :  { %2494 = vrcp.f32 %v664_v16  ;;  %v3336_v16 = vld [vmem:[#allocation9 + $0x1c0] sm:$0xff] }
 0x15a   :  { %v2489_v10 = vpop.eup %2488 }
 0x15b   :  { %v2491_v35 = vpop.eup %2490 }
 0x15c   :  { %v2493_v5 = vpop.eup %2492  ;;  %v668_v13 = vmul.f32 %v2491_v35, %v2489_v10  ;;  %v3324_v10 = vld [vmem:[#allocation9 + $0x1e0] sm:$0xff]  ;;  %v3330_v35 = vld [vmem:[#allocation9 + $0x1c8] sm:$0xff] }
 0x15d   :  { %v667_v6 = vmul.f32 %v2493_v5, %v98_v17  ;;  %v2495_v18 = vpop.eup %2494  ;;  %v3326_v17 = vld [vmem:[#allocation9 + $0x1f0] sm:$0xff]  ;;  %v3332_v5 = vld [vmem:[#allocation9 + $0x1d8] sm:$0xff] }
 0x15f   :  { %v3241_v53 = vadd.f32 %v668_v13, %v667_v6  ;;  %v3338_v13 = vld [vmem:[#allocation9 + $0x1d0] sm:$0xff]  ;;  %v3342_v6 = vld [vmem:[#allocation9 + $0x1a8] sm:$0xff] }
 0x161   :  { %2496 = vtanh.f32 %v3241_v53 }
 0x16e   :  { %v2497_v9 = vpop.eup %2496 }
 0x16f   :  { %v671_v19 = vmul.f32 %v2497_v9, %v2495_v18  ;;  %v3348_v18 = vld [vmem:[#allocation9 + $0x1a0] sm:$0xff]  ;;  %v3350_v9 = vld [vmem:[#allocation9 + $0x1b0] sm:$0xff] }
 0x171   :  { %672 = vst [vmem:[#allocation12] sm:$0xff] %v671_v19  ;;  %809 = vmatmul.mubr.f32.vlgmr.msra.gmra.mxu0 %v671_v19  ;;  %880 = vmatmul.mubr.f32.vlgmr.msra.gmra.mxu1 %v671_v19  ;;  %v3354_v19 = vld [vmem:[#allocation9 + $0x188] sm:$0xff] }
 0x172   :  { %988 = vmatpush1.msra.mxu0 %v2862_v20  ;;  %1059 = vmatpush1.msra.mxu1 %v2864_v21  ;;  %v3889_v20 = vld [vmem:[#allocation21_spill] sm:$0xff]  ;;  %v3890_v21 = vld [vmem:[#allocation22_spill] sm:$0xff] }
 0x173   :  { %989 = vmatprep.subr.mxu0 %v2868_v22  ;;  %1060 = vmatprep.subr.mxu1 %v2870_v23  ;;  %v3891_v22 = vld [vmem:[#allocation23_spill] sm:$0xff]  ;;  %v3892_v23 = vld [vmem:[#allocation24_spill] sm:$0xff]  ;;  %3914 = vst [vmem:[#allocation21_spill] sm:$0xff] %v3318_v8  ;;  %3915 = vst [vmem:[#allocation22_spill] sm:$0xff] %v3320_v11 }
 0x174   :  { %990 = vmatpush1.msra.mxu0 %v2876_v24  ;;  %1061 = vmatpush1.msra.mxu1 %v2878_v25  ;;  %v3893_v24 = vld [vmem:[#allocation25_spill] sm:$0xff]  ;;  %v3894_v25 = vld [vmem:[#allocation26_spill] sm:$0xff] }
 0x175   :  { %991 = vmatprep.subr.mxu0 %v2884_v27  ;;  %1062 = vmatprep.subr.mxu1 %v2886_v28  ;;  %v3895_v27 = vld [vmem:[#allocation27_spill] sm:$0xff]  ;;  %v3896_v28 = vld [vmem:[#allocation28_spill] sm:$0xff] }
 0x176   :  { %992 = vmatpush1.msra.mxu0 %v2890_v29  ;;  %1063 = vmatpush1.msra.mxu1 %v2892_v30  ;;  %v3897_v29 = vld [vmem:[#allocation29_spill] sm:$0xff]  ;;  %v3898_v30 = vld [vmem:[#allocation30_spill] sm:$0xff] }
 0x177   :  { %993 = vmatprep.subr.mxu0 %v2896_v31  ;;  %1064 = vmatprep.subr.mxu1 %v2898_v32  ;;  %v3899_v31 = vld [vmem:[#allocation31_spill] sm:$0xff]  ;;  %v3900_v32 = vld [vmem:[#allocation32_spill] sm:$0xff] }
 0x178   :  { %994 = vmatpush1.msra.mxu0 %v2904_v33  ;;  %1065 = vmatpush1.msra.mxu1 %v2906_v34  ;;  %v3901_v33 = vld [vmem:[#allocation33_spill] sm:$0xff]  ;;  %v3902_v34 = vld [vmem:[#allocation34_spill] sm:$0xff] }
 0x179   :  { %995 = vmatprep.subr.mxu0 %v2912_v36  ;;  %1066 = vmatprep.subr.mxu1 %v2914_v37  ;;  %v3903_v36 = vld [vmem:[#allocation35_spill] sm:$0xff]  ;;  %v3904_v37 = vld [vmem:[#allocation36_spill] sm:$0xff] }
 0x17a   :  { %996 = vmatpush1.msra.mxu0 %v2918_v38  ;;  %1067 = vmatpush1.msra.mxu1 %v2920_v39  ;;  %v3905_v38 = vld [vmem:[#allocation37_spill] sm:$0xff]  ;;  %v3906_v39 = vld [vmem:[#allocation38_spill] sm:$0xff] }
 0x17b   :  { %997 = vmatprep.subr.mxu0 %v2924_v40  ;;  %1068 = vmatprep.subr.mxu1 %v2926_v41  ;;  %v3907_v40 = vld [vmem:[#allocation39_spill] sm:$0xff]  ;;  %v3908_v41 = vmov 0.0  }
 0x17c   :  { %998 = vmatpush1.msra.mxu0 %v2932_v42  ;;  %1069 = vmatpush1.msra.mxu1 %v2934_v43  ;;  %v3909_v42 = vld [vmem:[#allocation40_spill] sm:$0xff] }
 0x17d   :  { %999 = vmatprep.subr.mxu0 %v2940_v45  ;;  %1070 = vmatprep.subr.mxu1 %v2942_v46  ;;  %v3910_v45 = vld [vmem:[#allocation41_spill] sm:$0xff] }
 0x17e   :  { %1000 = vmatpush1.msra.mxu0 %v2946_v47  ;;  %1071 = vmatpush1.msra.mxu1 %v2948_v48 }
 0x17f   :  { %1001 = vmatprep.subr.mxu0 %v2952_v49  ;;  %1072 = vmatprep.subr.mxu1 %v2954_v50  ;;  %v3911_v49 = vld [vmem:[#allocation43_spill] sm:$0xff] }
 0x180   :  { %1002 = vmatpush1.msra.mxu0 %v2960_v51  ;;  %1073 = vmatpush1.msra.mxu1 %v2962_v52 }
 0x181   :  { %1003 = vmatprep.subr.mxu0 %v2968_v54  ;;  %1074 = vmatprep.subr.mxu1 %v2970_v55  ;;  %v3912_v55 = vld [vmem:[#allocation44_spill] sm:$0xff] }
 0x182   :  { %1004 = vmatpush1.msra.mxu0 %v2974_v56  ;;  %1075 = vmatpush1.msra.mxu1 %v2976_v57  ;;  %v3913_v57 = vld [vmem:[#allocation42_spill] sm:$0xff] }
 0x183   :  { %1005 = vmatprep.subr.mxu0 %v2980_v58  ;;  %1076 = vmatprep.subr.mxu1 %v2982_v59 }
 0x184   :  { %1006 = vmatpush1.msra.mxu0 %v2988_v60  ;;  %1077 = vmatpush1.msra.mxu1 %v2990_v61 }
 0x185   :  { %1007 = vmatprep.subr.mxu0 %v2996_v63  ;;  %1078 = vmatprep.subr.mxu1 %v2998_v1 }
 0x186   :  { %1008 = vmatpush1.msra.mxu0 %v3002_v2  ;;  %1079 = vmatpush1.msra.mxu1 %v3004_v3 }
 0x187   :  { %1009 = vmatprep.subr.mxu0 %v3889_v20  ;;  %1080 = vmatprep.subr.mxu1 %v3890_v21  ;;  %v3356_v20 = vld [vmem:[#allocation9 + $0x198] sm:$0xff]  ;;  %v3360_v21 = vld [vmem:[#allocation9 + $0x180] sm:$0xff] }
 0x188   :  { %1010 = vmatpush1.msra.mxu0 %v3891_v22  ;;  %1081 = vmatpush1.msra.mxu1 %v3892_v23  ;;  %v3362_v22 = vld [vmem:[#allocation9 + $0x190] sm:$0xff]  ;;  %v3366_v23 = vld [vmem:[#allocation9 + $0x168] sm:$0xff] }
 0x189   :  { %1011 = vmatprep.subr.mxu0 %v3893_v24  ;;  %1082 = vmatprep.subr.mxu1 %v3894_v25  ;;  %v3368_v24 = vld [vmem:[#allocation9 + $0x178] sm:$0xff]  ;;  %v3372_v25 = vld [vmem:[#allocation9 + $0x160] sm:$0xff] }
 0x18a   :  { %1012 = vmatpush1.msra.mxu0 %v3895_v27  ;;  %1083 = vmatpush1.msra.mxu1 %v3896_v28  ;;  %v3374_v27 = vld [vmem:[#allocation9 + $0x170] sm:$0xff]  ;;  %v3378_v28 = vld [vmem:[#allocation9 + $0x148] sm:$0xff] }
 0x18b   :  { %1013 = vmatprep.subr.mxu0 %v3897_v29  ;;  %1084 = vmatprep.subr.mxu1 %v3898_v30  ;;  %v3380_v29 = vld [vmem:[#allocation9 + $0x158] sm:$0xff]  ;;  %v3384_v30 = vld [vmem:[#allocation9 + $0x140] sm:$0xff] }
 0x18c   :  { %1014 = vmatpush1.msra.mxu0 %v3899_v31  ;;  %1085 = vmatpush1.msra.mxu1 %v3900_v32  ;;  %v3386_v31 = vld [vmem:[#allocation9 + $0x150] sm:$0xff]  ;;  %v3390_v32 = vld [vmem:[#allocation9 + $0x128] sm:$0xff] }
 0x18d   :  { %1015 = vmatprep.subr.mxu0 %v3901_v33  ;;  %1086 = vmatprep.subr.mxu1 %v3902_v34  ;;  %v3392_v33 = vld [vmem:[#allocation9 + $0x138] sm:$0xff]  ;;  %v3396_v34 = vld [vmem:[#allocation9 + $0x120] sm:$0xff] }
 0x18e   :  { %1016 = vmatpush1.msra.mxu0 %v3903_v36  ;;  %1087 = vmatpush1.msra.mxu1 %v3904_v37  ;;  %v3398_v36 = vld [vmem:[#allocation9 + $0x130] sm:$0xff]  ;;  %v3402_v37 = vld [vmem:[#allocation9 + $0x108] sm:$0xff] }
 0x18f   :  { %1017 = vmatprep.subr.mxu0 %v3905_v38  ;;  %1088 = vmatprep.subr.mxu1 %v3906_v39  ;;  %v3404_v38 = vld [vmem:[#allocation9 + $0x118] sm:$0xff]  ;;  %v3406_v39 = vld [vmem:[#allocation9 + $0x100] sm:$0xff] }
 0x190   :  { %1018 = vmatpush1.msra.mxu0 %v3907_v40  ;;  %1051 = vmatprep.mubr.f32.mxu0 %v3908_v41  ;;  %v3410_v40 = vld [vmem:[#allocation9 + $0x110] sm:$0xff] }
 0x191   :  { %1089 = vmatpush1.msra.mxu1 %v3909_v42  ;;  %1122 = vmatprep.mubr.f32.mxu1 %v3908_v41  ;;  %v3412_v42 = vld [vmem:[#allocation9 + $0xe8] sm:$0xff] }
 0x192   :  { %1230 = vmatprep.subr.mxu0 %v3318_v8  ;;  %1301 = vmatprep.subr.mxu1 %v3320_v11 }
 0x231   :  { %v810_v43 = vpop.f32.mrf.mxu0  ;;  %v881_v51 = vpop.f32.mrf.mxu1 }
 0x232   :  { %v886_v46 = vadd.f32 %v810_v43, %v3910_v45  ;;  %v888_v58 = vadd.f32 %v881_v51, %v3913_v57  ;;  %v3414_v43 = vld [vmem:[#allocation9 + $0xf8] sm:$0xff]  ;;  %v3418_v45 = vld [vmem:[#allocation9 + $0xe0] sm:$0xff]  ;;  %v3434_v51 = vld [vmem:[#allocation9 + $0xa8] sm:$0xff] }
 0x233   :  { %v812_v47 = vpop.f32.mrf.mxu0  ;;  %v883_v54 = vpop.f32.mrf.mxu1  ;;  %v3448_v57 = vld [vmem:[#allocation9 + $0x98] sm:$0xff] }
 0x234   :  { %v2448_v48 = vmul.f32 -1.442695, %v886_v46  ;;  %v887_v50 = vadd.f32 %v812_v47, %v3911_v49  ;;  %v889_v56 = vadd.f32 %v883_v54, %v3912_v55  ;;  %v3420_v46 = vld [vmem:[#allocation9 + $0xf0] sm:$0xff]  ;;  %v3422_v47 = vld [vmem:[#allocation9 + $0xc8] sm:$0xff]  ;;  %v3428_v49 = vld [vmem:[#allocation9 + $0xc0] sm:$0xff] }
 0x235   :  { %v3440_v54 = vld [vmem:[#allocation9 + $0xa0] sm:$0xff]  ;;  %v3442_v55 = vld [vmem:[#allocation9 + $0xb0] sm:$0xff] }
 0x236   :  { %2498 = vpow2.f32 %v2448_v48  ;;  %v2449_v52 = vmul.f32 -1.442695, %v887_v50  ;;  %v2450_v59 = vmul.f32 -1.442695, %v889_v56  ;;  %v3426_v48 = vld [vmem:[#allocation9 + $0xd8] sm:$0xff]  ;;  %v3430_v50 = vld [vmem:[#allocation9 + $0xd0] sm:$0xff] }
 0x237   :  { %v3446_v56 = vld [vmem:[#allocation9 + $0x88] sm:$0xff] }
 0x238   :  { %2500 = vpow2.f32 %v2449_v52  ;;  %v3436_v52 = vld [vmem:[#allocation9 + $0xb8] sm:$0xff] }
 0x239   :  { %2502 = vtanh.f32 %v888_v58  ;;  %v3452_v58 = vld [vmem:[#allocation9 + $0x80] sm:$0xff] }
 0x23a   :  { %2504 = vpow2.f32 %v2450_v59  ;;  %v3454_v59 = vld [vmem:[#allocation9 + $0x90] sm:$0xff] }
 0x23b   :  { %3916 = vst [vmem:[#allocation23_spill] sm:$0xff] %v3454_v59 }
 0x243   :  { %v2499_v60 = vpop.eup %2498 }
 0x244   :  { %v893_v61 = vadd.f32 1.0, %v2499_v60  ;;  %v3458_v60 = vld [vmem:[#allocation9 + $0x68] sm:$0xff] }
 0x245   :  { %v2501_v63 = vpop.eup %2500  ;;  %3917 = vst [vmem:[#allocation24_spill] sm:$0xff] %v3458_v60 }
 0x246   :  { %2506 = vrcp.f32 %v893_v61  ;;  %v899_v1 = vadd.f32 1.0, %v2501_v63  ;;  %v2503_v2 = vpop.eup %2502  ;;  %v3460_v61 = vld [vmem:[#allocation9 + $0x78] sm:$0xff]  ;;  %v3464_v63 = vld [vmem:[#allocation9 + $0x60] sm:$0xff] }
 0x247   :  { %v2505_v3 = vpop.eup %2504  ;;  %3918 = vst [vmem:[#allocation25_spill] sm:$0xff] %v3460_v61  ;;  %3919 = vst [vmem:[#allocation26_spill] sm:$0xff] %v3464_v63 }
 0x248   :  { %2508 = vrcp.f32 %v899_v1  ;;  %v906_v4 = vadd.f32 1.0, %v2505_v3  ;;  %v3466_v1 = vld [vmem:[#allocation9 + $0x70] sm:$0xff]  ;;  %v3472_v3 = vld [vmem:[#allocation9 + $0x58] sm:$0xff] }
 0x249   :  { %3920 = vst [vmem:[#allocation27_spill] sm:$0xff] %v3466_v1  ;;  %3922 = vst [vmem:[#allocation29_spill] sm:$0xff] %v3472_v3 }
 0x24a   :  { %2510 = vrcp.f32 %v906_v4  ;;  %v3484_v4 = vld [vmem:[#allocation9 + $0x38] sm:$0xff] }
 0x24b   :  { %3926 = vst [vmem:[#allocation33_spill] sm:$0xff] %v3484_v4 }
 0x253   :  { %v2507_v7 = vpop.eup %2506 }
 0x254   :  { %v910_v44 = vmul.f32 %v2507_v7, %v2503_v2  ;;  %v3470_v2 = vld [vmem:[#allocation9 + $0x48] sm:$0xff]  ;;  %v3476_v7 = vld [vmem:[#allocation9 + $0x40] sm:$0xff] }
 0x255   :  { %v2509_v62 = vpop.eup %2508  ;;  %3921 = vst [vmem:[#allocation28_spill] sm:$0xff] %v3470_v2  ;;  %3923 = vst [vmem:[#allocation30_spill] sm:$0xff] %v3476_v7 }
 0x256   :  { %v909_v14 = vmul.f32 %v2509_v62, %v3241_v53  ;;  %v3344_v53 = vld [vmem:[#allocation9 + $0x1b8] sm:$0xff]  ;;  %v3482_v62 = vld [vmem:[#allocation9 + $0x28] sm:$0xff] }
 0x257   :  { %v2511_v26 = vpop.eup %2510  ;;  %3925 = vst [vmem:[#allocation32_spill] sm:$0xff] %v3482_v62 }
 0x258   :  { %v3313_v15 = vadd.f32 %v910_v44, %v909_v14  ;;  %v3478_v44 = vld [vmem:[#allocation9 + $0x50] sm:$0xff]  ;;  %v3488_v14 = vld [vmem:[#allocation9 + $0x20] sm:$0xff] }
 0x259   :  { %3924 = vst [vmem:[#allocation31_spill] sm:$0xff] %v3478_v44  ;;  %3927 = vst [vmem:[#allocation34_spill] sm:$0xff] %v3488_v14 }
 0x25a   :  { %2512 = vtanh.f32 %v3313_v15 }
 0x267   :  { %v2513_v0 = vpop.eup %2512 }
 0x268   :  { %v913_v12 = vmul.f32 %v2513_v0, %v2511_v26  ;;  %v3490_v26 = vld [vmem:[#allocation9 + $0x30] sm:$0xff]  ;;  %v3494_v0 = vld [vmem:[#allocation9 + $0x8] sm:$0xff] }
 0x269   :  { %3928 = vst [vmem:[#allocation35_spill] sm:$0xff] %v3490_v26  ;;  %3929 = vst [vmem:[#allocation36_spill] sm:$0xff] %v3494_v0 }
 0x26a   :  { %915 = vst [vmem:[#allocation12 + $0x8] sm:$0xff] %v913_v12  ;;  %1052 = vmatmul.mubr.f32.vlgmr.msra.gmra.mxu0 %v913_v12  ;;  %1123 = vmatmul.mubr.f32.vlgmr.msra.gmra.mxu1 %v913_v12  ;;  %v3496_v12 = vld [vmem:[#allocation9 + $0x18] sm:$0xff] }
 0x26b   :  { %1294 = vmatprep.mubr.f32.mxu0 %v3908_v41  ;;  %1365 = vmatprep.mubr.f32.mxu1 %v3908_v41  ;;  %3930 = vst [vmem:[#allocation37_spill] sm:$0xff] %v3496_v12  ;;  %v3500_v41 = vld [vmem:[#allocation9] sm:$0xff] }
 0x26c   :  { %1231 = vmatpush1.msra.mxu0 %v3324_v10  ;;  %1302 = vmatpush1.msra.mxu1 %v3326_v17  ;;  %3931 = vst [vmem:[#allocation38_spill] sm:$0xff] %v3500_v41 }
 0x26d   :  { %1232 = vmatprep.subr.mxu0 %v3330_v35  ;;  %1303 = vmatprep.subr.mxu1 %v3332_v5 }
 0x26e   :  { %1233 = vmatpush1.msra.mxu0 %v3336_v16  ;;  %1304 = vmatpush1.msra.mxu1 %v3338_v13 }
 0x26f   :  { %1234 = vmatprep.subr.mxu0 %v3342_v6  ;;  %1305 = vmatprep.subr.mxu1 %v3344_v53 }
 0x270   :  { %1235 = vmatpush1.msra.mxu0 %v3348_v18  ;;  %1306 = vmatpush1.msra.mxu1 %v3350_v9 }
 0x271   :  { %1236 = vmatprep.subr.mxu0 %v3354_v19  ;;  %1307 = vmatprep.subr.mxu1 %v3356_v20 }
 0x272   :  { %1237 = vmatpush1.msra.mxu0 %v3360_v21  ;;  %1308 = vmatpush1.msra.mxu1 %v3362_v22 }
 0x273   :  { %1238 = vmatprep.subr.mxu0 %v3366_v23  ;;  %1309 = vmatprep.subr.mxu1 %v3368_v24 }
 0x274   :  { %1239 = vmatpush1.msra.mxu0 %v3372_v25  ;;  %1310 = vmatpush1.msra.mxu1 %v3374_v27 }
 0x275   :  { %1240 = vmatprep.subr.mxu0 %v3378_v28  ;;  %1311 = vmatprep.subr.mxu1 %v3380_v29 }
 0x276   :  { %1241 = vmatpush1.msra.mxu0 %v3384_v30  ;;  %1312 = vmatpush1.msra.mxu1 %v3386_v31 }
 0x277   :  { %1242 = vmatprep.subr.mxu0 %v3390_v32  ;;  %1313 = vmatprep.subr.mxu1 %v3392_v33 }
 0x278   :  { %1243 = vmatpush1.msra.mxu0 %v3396_v34  ;;  %1314 = vmatpush1.msra.mxu1 %v3398_v36 }
 0x279   :  { %1244 = vmatprep.subr.mxu0 %v3402_v37  ;;  %1315 = vmatprep.subr.mxu1 %v3404_v38 }
 0x27a   :  { %1245 = vmatpush1.msra.mxu0 %v3406_v39  ;;  %1316 = vmatpush1.msra.mxu1 %v3410_v40 }
 0x27b   :  { %1246 = vmatprep.subr.mxu0 %v3412_v42  ;;  %1317 = vmatprep.subr.mxu1 %v3414_v43 }
 0x27c   :  { %1247 = vmatpush1.msra.mxu0 %v3418_v45  ;;  %1318 = vmatpush1.msra.mxu1 %v3420_v46 }
 0x27d   :  { %1248 = vmatprep.subr.mxu0 %v3422_v47  ;;  %1319 = vmatprep.subr.mxu1 %v3426_v48 }
 0x27e   :  { %1249 = vmatpush1.msra.mxu0 %v3428_v49  ;;  %1320 = vmatpush1.msra.mxu1 %v3430_v50 }
 0x27f   :  { %1250 = vmatprep.subr.mxu0 %v3434_v51  ;;  %1321 = vmatprep.subr.mxu1 %v3436_v52 }
 0x280   :  { %1251 = vmatpush1.msra.mxu0 %v3440_v54  ;;  %1322 = vmatpush1.msra.mxu1 %v3442_v55 }
 0x281   :  { %1252 = vmatprep.subr.mxu0 %v3446_v56  ;;  %1323 = vmatprep.subr.mxu1 %v3448_v57 }
 0x282   :  { %1253 = vmatpush1.msra.mxu0 %v3452_v58  ;;  %1324 = vmatpush1.msra.mxu1 %v3454_v59 }
 0x283   :  { %1254 = vmatprep.subr.mxu0 %v3458_v60  ;;  %1325 = vmatprep.subr.mxu1 %v3460_v61  ;;  %v3936_v61 = vld [vmem:[#allocation46_spill] sm:$0xff] }
 0x284   :  { %1255 = vmatpush1.msra.mxu0 %v3464_v63  ;;  %1326 = vmatpush1.msra.mxu1 %v3466_v1  ;;  %v3935_v63 = vld [vmem:[#allocation48_spill] sm:$0xff] }
 0x285   :  { %1256 = vmatprep.subr.mxu0 %v3470_v2  ;;  %1327 = vmatprep.subr.mxu1 %v3472_v3  ;;  %v3502_v2 = vld [vmem:[#allocation9 + $0x10] sm:$0xff] }
 0x286   :  { %1257 = vmatpush1.msra.mxu0 %v3476_v7  ;;  %1328 = vmatpush1.msra.mxu1 %v3478_v44  ;;  %3932 = vst [vmem:[#allocation39_spill] sm:$0xff] %v3502_v2 }
 0x287   :  { %1258 = vmatprep.subr.mxu0 %v3482_v62  ;;  %1329 = vmatprep.subr.mxu1 %v3484_v4  ;;  %v3933_v62 = vld [vmem:[#allocation45_spill] sm:$0xff] }
 0x288   :  { %1259 = vmatpush1.msra.mxu0 %v3488_v14  ;;  %1330 = vmatpush1.msra.mxu1 %v3490_v26  ;;  %v3934_v14 = vld [vmem:[#allocation47_spill] sm:$0xff] }
 0x289   :  { %1260 = vmatprep.subr.mxu0 %v3494_v0  ;;  %1331 = vmatprep.subr.mxu1 %v3496_v12 }
 0x28a   :  { %1261 = vmatpush1.msra.mxu0 %v3500_v41  ;;  %1332 = vmatpush1.msra.mxu1 %v3502_v2 }
 0x28b   :  { %1473 = vmatprep.subr.mxu0 %v3318_v8  ;;  %1544 = vmatprep.subr.mxu1 %v3320_v11 }
 0x32a   :  { %v1053_v4 = vpop.f32.mrf.mxu0  ;;  %v1124_v26 = vpop.f32.mrf.mxu1 }
 0x32b   :  { %v1129_v44 = vadd.f32 %v1053_v4, %v3933_v62  ;;  %v1131_v2 = vadd.f32 %v1124_v26, %v3936_v61  ;;  %v3942_v26 = vld [vmem:[#allocation28_spill] sm:$0xff] }
 0x32c   :  { %v1055_v7 = vpop.f32.mrf.mxu0  ;;  %v1126_v12 = vpop.f32.mrf.mxu1 }
 0x32d   :  { %v2451_v3 = vmul.f32 -1.442695, %v1129_v44  ;;  %v1130_v1 = vadd.f32 %v1055_v7, %v3934_v14  ;;  %v1132_v41 = vadd.f32 %v1126_v12, %v3935_v63  ;;  %v3943_v12 = vld [vmem:[#allocation29_spill] sm:$0xff] }
 0x32f   :  { %2514 = vpow2.f32 %v2451_v3  ;;  %v2452_v0 = vmul.f32 -1.442695, %v1130_v1  ;;  %v2453_v60 = vmul.f32 -1.442695, %v1132_v41 }
 0x331   :  { %2516 = vpow2.f32 %v2452_v0 }
 0x332   :  { %2518 = vtanh.f32 %v1131_v2  ;;  %v3941_v2 = vld [vmem:[#allocation27_spill] sm:$0xff] }
 0x333   :  { %2520 = vpow2.f32 %v2453_v60  ;;  %v3940_v60 = vld [vmem:[#allocation26_spill] sm:$0xff] }
 0x33c   :  { %v2515_v8 = vpop.eup %2514 }
 0x33d   :  { %v1136_v59 = vadd.f32 1.0, %v2515_v8 }
 0x33e   :  { %v2517_v11 = vpop.eup %2516 }
 0x33f   :  { %2522 = vrcp.f32 %v1136_v59  ;;  %v1142_v62 = vadd.f32 1.0, %v2517_v11  ;;  %v2519_v44 = vpop.eup %2518  ;;  %v3938_v11 = vld [vmem:[#allocation24_spill] sm:$0xff]  ;;  %v3939_v59 = vld [vmem:[#allocation25_spill] sm:$0xff] }
 0x340   :  { %v2521_v7 = vpop.eup %2520 }
 0x341   :  { %2524 = vrcp.f32 %v1142_v62  ;;  %v1149_v14 = vadd.f32 1.0, %v2521_v7  ;;  %v3944_v62 = vld [vmem:[#allocation30_spill] sm:$0xff]  ;;  %v3946_v7 = vld [vmem:[#allocation32_spill] sm:$0xff] }
 0x343   :  { %2526 = vrcp.f32 %v1149_v14  ;;  %v3950_v14 = vld [vmem:[#allocation36_spill] sm:$0xff] }
 0x34c   :  { %v2523_v3 = vpop.eup %2522 }
 0x34d   :  { %v1153_v4 = vmul.f32 %v2523_v3, %v2519_v44  ;;  %v3945_v44 = vld [vmem:[#allocation31_spill] sm:$0xff]  ;;  %v3947_v3 = vld [vmem:[#allocation33_spill] sm:$0xff] }
 0x34e   :  { %v2525_v1 = vpop.eup %2524 }
 0x34f   :  { %v1152_v0 = vmul.f32 %v2525_v1, %v3313_v15  ;;  %v3937_v15 = vld [vmem:[#allocation23_spill] sm:$0xff] }
 0x350   :  { %v2527_v41 = vpop.eup %2526  ;;  %v3949_v1 = vld [vmem:[#allocation35_spill] sm:$0xff] }
 0x351   :  { %v3517_v63 = vadd.f32 %v1153_v4, %v1152_v0  ;;  %v3948_v4 = vld [vmem:[#allocation34_spill] sm:$0xff]  ;;  %v3951_v0 = vld [vmem:[#allocation37_spill] sm:$0xff] }
 0x353   :  { %2528 = vtanh.f32 %v3517_v63 }
 0x360   :  { %v2529_v8 = vpop.eup %2528 }
 0x361   :  { %v1156_v61 = vmul.f32 %v2529_v8, %v2527_v41  ;;  %v3952_v41 = vld [vmem:[#allocation38_spill] sm:$0xff]  ;;  %v3953_v8 = vmov 0.0  }
 0x363   :  { %1158 = vst [vmem:[#allocation12 + $0x10] sm:$0xff] %v1156_v61  ;;  %1295 = vmatmul.mubr.f32.vlgmr.msra.gmra.mxu0 %v1156_v61  ;;  %1366 = vmatmul.mubr.f32.vlgmr.msra.gmra.mxu1 %v1156_v61  ;;  %v3954_v61 = vld [vmem:[#allocation39_spill] sm:$0xff] }
 0x364   :  { %1474 = vmatpush1.msra.mxu0 %v3324_v10  ;;  %1545 = vmatpush1.msra.mxu1 %v3326_v17 }
 0x365   :  { %1475 = vmatprep.subr.mxu0 %v3330_v35  ;;  %1546 = vmatprep.subr.mxu1 %v3332_v5 }
 0x366   :  { %1476 = vmatpush1.msra.mxu0 %v3336_v16  ;;  %1547 = vmatpush1.msra.mxu1 %v3338_v13 }
 0x367   :  { %1477 = vmatprep.subr.mxu0 %v3342_v6  ;;  %1548 = vmatprep.subr.mxu1 %v3344_v53 }
 0x368   :  { %1478 = vmatpush1.msra.mxu0 %v3348_v18  ;;  %1549 = vmatpush1.msra.mxu1 %v3350_v9 }
 0x369   :  { %1479 = vmatprep.subr.mxu0 %v3354_v19  ;;  %1550 = vmatprep.subr.mxu1 %v3356_v20 }
 0x36a   :  { %1480 = vmatpush1.msra.mxu0 %v3360_v21  ;;  %1551 = vmatpush1.msra.mxu1 %v3362_v22 }
 0x36b   :  { %1481 = vmatprep.subr.mxu0 %v3366_v23  ;;  %1552 = vmatprep.subr.mxu1 %v3368_v24 }
 0x36c   :  { %1482 = vmatpush1.msra.mxu0 %v3372_v25  ;;  %1553 = vmatpush1.msra.mxu1 %v3374_v27 }
 0x36d   :  { %1483 = vmatprep.subr.mxu0 %v3378_v28  ;;  %1554 = vmatprep.subr.mxu1 %v3380_v29 }
 0x36e   :  { %1484 = vmatpush1.msra.mxu0 %v3384_v30  ;;  %1555 = vmatpush1.msra.mxu1 %v3386_v31 }
 0x36f   :  { %1485 = vmatprep.subr.mxu0 %v3390_v32  ;;  %1556 = vmatprep.subr.mxu1 %v3392_v33 }
 0x370   :  { %1486 = vmatpush1.msra.mxu0 %v3396_v34  ;;  %1557 = vmatpush1.msra.mxu1 %v3398_v36 }
 0x371   :  { %1487 = vmatprep.subr.mxu0 %v3402_v37  ;;  %1558 = vmatprep.subr.mxu1 %v3404_v38 }
 0x372   :  { %1488 = vmatpush1.msra.mxu0 %v3406_v39  ;;  %1559 = vmatpush1.msra.mxu1 %v3410_v40 }
 0x373   :  { %1489 = vmatprep.subr.mxu0 %v3412_v42  ;;  %1560 = vmatprep.subr.mxu1 %v3414_v43 }
 0x374   :  { %1490 = vmatpush1.msra.mxu0 %v3418_v45  ;;  %1561 = vmatpush1.msra.mxu1 %v3420_v46 }
 0x375   :  { %1491 = vmatprep.subr.mxu0 %v3422_v47  ;;  %1562 = vmatprep.subr.mxu1 %v3426_v48 }
 0x376   :  { %1492 = vmatpush1.msra.mxu0 %v3428_v49  ;;  %1563 = vmatpush1.msra.mxu1 %v3430_v50 }
 0x377   :  { %1493 = vmatprep.subr.mxu0 %v3434_v51  ;;  %1564 = vmatprep.subr.mxu1 %v3436_v52 }
 0x378   :  { %1494 = vmatpush1.msra.mxu0 %v3440_v54  ;;  %1565 = vmatpush1.msra.mxu1 %v3442_v55 }
 0x379   :  { %1495 = vmatprep.subr.mxu0 %v3446_v56  ;;  %1566 = vmatprep.subr.mxu1 %v3448_v57 }
 0x37a   :  { %1496 = vmatpush1.msra.mxu0 %v3452_v58  ;;  %1567 = vmatpush1.msra.mxu1 %v3937_v15 }
 0x37b   :  { %1497 = vmatprep.subr.mxu0 %v3938_v11  ;;  %1568 = vmatprep.subr.mxu1 %v3939_v59  ;;  %v3960_v59 = vld [vmem:[#allocation50_spill] sm:$0xff] }
 0x37c   :  { %1498 = vmatpush1.msra.mxu0 %v3940_v60  ;;  %1569 = vmatpush1.msra.mxu1 %v3941_v2  ;;  %v3959_v60 = vld [vmem:[#allocation52_spill] sm:$0xff] }
 0x37d   :  { %1499 = vmatprep.subr.mxu0 %v3942_v26  ;;  %1570 = vmatprep.subr.mxu1 %v3943_v12 }
 0x37e   :  { %1500 = vmatpush1.msra.mxu0 %v3944_v62  ;;  %1571 = vmatpush1.msra.mxu1 %v3945_v44  ;;  %v3955_v44 = vld [vmem:[#allocation21_spill] sm:$0xff] }
 0x37f   :  { %1501 = vmatprep.subr.mxu0 %v3946_v7  ;;  %1572 = vmatprep.subr.mxu1 %v3947_v3  ;;  %v3956_v7 = vld [vmem:[#allocation22_spill] sm:$0xff] }
 0x380   :  { %1502 = vmatpush1.msra.mxu0 %v3948_v4  ;;  %1573 = vmatpush1.msra.mxu1 %v3949_v1  ;;  %v3957_v4 = vld [vmem:[#allocation49_spill] sm:$0xff] }
 0x381   :  { %1503 = vmatprep.subr.mxu0 %v3950_v14  ;;  %1574 = vmatprep.subr.mxu1 %v3951_v0  ;;  %v3958_v14 = vld [vmem:[#allocation51_spill] sm:$0xff] }
 0x382   :  { %1504 = vmatpush1.msra.mxu0 %v3952_v41  ;;  %1537 = vmatprep.mubr.f32.mxu0 %v3953_v8 }
 0x383   :  { %1575 = vmatpush1.msra.mxu1 %v3954_v61  ;;  %1608 = vmatprep.mubr.f32.mxu1 %v3953_v8 }
 0x384   :  { %1716 = vmatprep.subr.mxu0 %v3955_v44  ;;  %1787 = vmatprep.subr.mxu1 %v3956_v7 }
 0x423   :  { %v1296_v3 = vpop.f32.mrf.mxu0  ;;  %v1367_v0 = vpop.f32.mrf.mxu1 }
 0x424   :  { %v1372_v62 = vadd.f32 %v1296_v3, %v3957_v4  ;;  %v1374_v8 = vadd.f32 %v1367_v0, %v3960_v59  ;;  %v3965_v0 = vld [vmem:[#allocation27_spill] sm:$0xff] }
 0x425   :  { %v1298_v1 = vpop.f32.mrf.mxu0  ;;  %v1369_v2 = vpop.f32.mrf.mxu1 }
 0x426   :  { %v2454_v12 = vmul.f32 -1.442695, %v1372_v62  ;;  %v1373_v26 = vadd.f32 %v1298_v1, %v3958_v14  ;;  %v1375_v61 = vadd.f32 %v1369_v2, %v3959_v60 }
 0x428   :  { %2530 = vpow2.f32 %v2454_v12  ;;  %v2455_v41 = vmul.f32 -1.442695, %v1373_v26  ;;  %v2456_v11 = vmul.f32 -1.442695, %v1375_v61  ;;  %v3967_v61 = vld [vmem:[#allocation29_spill] sm:$0xff] }
 0x42a   :  { %2532 = vpow2.f32 %v2455_v41 }
 0x42b   :  { %2534 = vtanh.f32 %v1374_v8  ;;  %v3966_v8 = vld [vmem:[#allocation28_spill] sm:$0xff] }
 0x42c   :  { %2536 = vpow2.f32 %v2456_v11  ;;  %v3963_v11 = vld [vmem:[#allocation25_spill] sm:$0xff] }
 0x435   :  { %v2531_v44 = vpop.eup %2530 }
 0x436   :  { %v1379_v15 = vadd.f32 1.0, %v2531_v44 }
 0x437   :  { %v2533_v7 = vpop.eup %2532 }
 0x438   :  { %2538 = vrcp.f32 %v1379_v15  ;;  %v1385_v3 = vadd.f32 1.0, %v2533_v7  ;;  %v2535_v62 = vpop.eup %2534  ;;  %v3962_v15 = vld [vmem:[#allocation24_spill] sm:$0xff]  ;;  %v3964_v7 = vld [vmem:[#allocation26_spill] sm:$0xff] }
 0x439   :  { %v2537_v4 = vpop.eup %2536 }
 0x43a   :  { %2540 = vrcp.f32 %v1385_v3  ;;  %v1392_v14 = vadd.f32 1.0, %v2537_v4  ;;  %v3968_v3 = vld [vmem:[#allocation30_spill] sm:$0xff]  ;;  %v3970_v4 = vld [vmem:[#allocation32_spill] sm:$0xff] }
 0x43c   :  { %2542 = vrcp.f32 %v1392_v14  ;;  %v3974_v14 = vld [vmem:[#allocation36_spill] sm:$0xff] }
 0x445   :  { %v2539_v12 = vpop.eup %2538 }
 0x446   :  { %v1396_v1 = vmul.f32 %v2539_v12, %v2535_v62  ;;  %v3969_v62 = vld [vmem:[#allocation31_spill] sm:$0xff]  ;;  %v3971_v12 = vld [vmem:[#allocation33_spill] sm:$0xff] }
 0x447   :  { %v2541_v26 = vpop.eup %2540 }
 0x448   :  { %v1395_v41 = vmul.f32 %v2541_v26, %v3517_v63  ;;  %v3961_v63 = vld [vmem:[#allocation23_spill] sm:$0xff] }
 0x449   :  { %v2543_v59 = vpop.eup %2542  ;;  %v3973_v26 = vld [vmem:[#allocation35_spill] sm:$0xff] }
 0x44a   :  { %v3591_v60 = vadd.f32 %v1396_v1, %v1395_v41  ;;  %v3972_v1 = vld [vmem:[#allocation34_spill] sm:$0xff]  ;;  %v3975_v41 = vld [vmem:[#allocation37_spill] sm:$0xff] }
 0x44c   :  { %2544 = vtanh.f32 %v3591_v60 }
 0x459   :  { %v2545_v2 = vpop.eup %2544 }
 0x45a   :  { %v1399_v44 = vmul.f32 %v2545_v2, %v2543_v59  ;;  %v3976_v59 = vld [vmem:[#allocation38_spill] sm:$0xff]  ;;  %v3977_v2 = vmov 0.0  }
 0x45c   :  { %1401 = vst [vmem:[#allocation12 + $0x18] sm:$0xff] %v1399_v44  ;;  %1538 = vmatmul.mubr.f32.vlgmr.msra.gmra.mxu0 %v1399_v44  ;;  %1609 = vmatmul.mubr.f32.vlgmr.msra.gmra.mxu1 %v1399_v44  ;;  %v3978_v44 = vld [vmem:[#allocation39_spill] sm:$0xff] }
 0x45d   :  { %1717 = vmatpush1.msra.mxu0 %v3324_v10  ;;  %1788 = vmatpush1.msra.mxu1 %v3326_v17 }
 0x45e   :  { %1718 = vmatprep.subr.mxu0 %v3330_v35  ;;  %1789 = vmatprep.subr.mxu1 %v3332_v5 }
 0x45f   :  { %1719 = vmatpush1.msra.mxu0 %v3336_v16  ;;  %1790 = vmatpush1.msra.mxu1 %v3338_v13 }
 0x460   :  { %1720 = vmatprep.subr.mxu0 %v3342_v6  ;;  %1791 = vmatprep.subr.mxu1 %v3344_v53 }
 0x461   :  { %1721 = vmatpush1.msra.mxu0 %v3348_v18  ;;  %1792 = vmatpush1.msra.mxu1 %v3350_v9 }
 0x462   :  { %1722 = vmatprep.subr.mxu0 %v3354_v19  ;;  %1793 = vmatprep.subr.mxu1 %v3356_v20 }
 0x463   :  { %1723 = vmatpush1.msra.mxu0 %v3360_v21  ;;  %1794 = vmatpush1.msra.mxu1 %v3362_v22 }
 0x464   :  { %1724 = vmatprep.subr.mxu0 %v3366_v23  ;;  %1795 = vmatprep.subr.mxu1 %v3368_v24 }
 0x465   :  { %1725 = vmatpush1.msra.mxu0 %v3372_v25  ;;  %1796 = vmatpush1.msra.mxu1 %v3374_v27 }
 0x466   :  { %1726 = vmatprep.subr.mxu0 %v3378_v28  ;;  %1797 = vmatprep.subr.mxu1 %v3380_v29 }
 0x467   :  { %1727 = vmatpush1.msra.mxu0 %v3384_v30  ;;  %1798 = vmatpush1.msra.mxu1 %v3386_v31 }
 0x468   :  { %1728 = vmatprep.subr.mxu0 %v3390_v32  ;;  %1799 = vmatprep.subr.mxu1 %v3392_v33 }
 0x469   :  { %1729 = vmatpush1.msra.mxu0 %v3396_v34  ;;  %1800 = vmatpush1.msra.mxu1 %v3398_v36 }
 0x46a   :  { %1730 = vmatprep.subr.mxu0 %v3402_v37  ;;  %1801 = vmatprep.subr.mxu1 %v3404_v38 }
 0x46b   :  { %1731 = vmatpush1.msra.mxu0 %v3406_v39  ;;  %1802 = vmatpush1.msra.mxu1 %v3410_v40 }
 0x46c   :  { %1732 = vmatprep.subr.mxu0 %v3412_v42  ;;  %1803 = vmatprep.subr.mxu1 %v3414_v43 }
 0x46d   :  { %1733 = vmatpush1.msra.mxu0 %v3418_v45  ;;  %1804 = vmatpush1.msra.mxu1 %v3420_v46 }
 0x46e   :  { %1734 = vmatprep.subr.mxu0 %v3422_v47  ;;  %1805 = vmatprep.subr.mxu1 %v3426_v48 }
 0x46f   :  { %1735 = vmatpush1.msra.mxu0 %v3428_v49  ;;  %1806 = vmatpush1.msra.mxu1 %v3430_v50 }
 0x470   :  { %1736 = vmatprep.subr.mxu0 %v3434_v51  ;;  %1807 = vmatprep.subr.mxu1 %v3436_v52 }
 0x471   :  { %1737 = vmatpush1.msra.mxu0 %v3440_v54  ;;  %1808 = vmatpush1.msra.mxu1 %v3442_v55 }
 0x472   :  { %1738 = vmatprep.subr.mxu0 %v3446_v56  ;;  %1809 = vmatprep.subr.mxu1 %v3448_v57 }
 0x473   :  { %1739 = vmatpush1.msra.mxu0 %v3452_v58  ;;  %1810 = vmatpush1.msra.mxu1 %v3961_v63 }
 0x474   :  { %1740 = vmatprep.subr.mxu0 %v3962_v15  ;;  %1811 = vmatprep.subr.mxu1 %v3963_v11  ;;  %v3984_v11 = vld [vmem:[#allocation54_spill] sm:$0xff] }
 0x475   :  { %1741 = vmatpush1.msra.mxu0 %v3964_v7  ;;  %1812 = vmatpush1.msra.mxu1 %v3965_v0  ;;  %v3983_v7 = vld [vmem:[#allocation56_spill] sm:$0xff] }
 0x476   :  { %1742 = vmatprep.subr.mxu0 %v3966_v8  ;;  %1813 = vmatprep.subr.mxu1 %v3967_v61 }
 0x477   :  { %1743 = vmatpush1.msra.mxu0 %v3968_v3  ;;  %1814 = vmatpush1.msra.mxu1 %v3969_v62  ;;  %v3979_v62 = vld [vmem:[#allocation21_spill] sm:$0xff] }
 0x478   :  { %1744 = vmatprep.subr.mxu0 %v3970_v4  ;;  %1815 = vmatprep.subr.mxu1 %v3971_v12  ;;  %v3980_v4 = vld [vmem:[#allocation22_spill] sm:$0xff] }
 0x479   :  { %1745 = vmatpush1.msra.mxu0 %v3972_v1  ;;  %1816 = vmatpush1.msra.mxu1 %v3973_v26  ;;  %v3981_v1 = vld [vmem:[#allocation53_spill] sm:$0xff] }
 0x47a   :  { %1746 = vmatprep.subr.mxu0 %v3974_v14  ;;  %1817 = vmatprep.subr.mxu1 %v3975_v41  ;;  %v3982_v14 = vld [vmem:[#allocation55_spill] sm:$0xff] }
 0x47b   :  { %1747 = vmatpush1.msra.mxu0 %v3976_v59  ;;  %1780 = vmatprep.mubr.f32.mxu0 %v3977_v2 }
 0x47c   :  { %1818 = vmatpush1.msra.mxu1 %v3978_v44  ;;  %1851 = vmatprep.mubr.f32.mxu1 %v3977_v2 }
 0x47d   :  { %1959 = vmatprep.subr.mxu0 %v3979_v62  ;;  %2030 = vmatprep.subr.mxu1 %v3980_v4 }
 0x51c   :  { %v1539_v12 = vpop.f32.mrf.mxu0  ;;  %v1610_v41 = vpop.f32.mrf.mxu1 }
 0x51d   :  { %v1615_v3 = vadd.f32 %v1539_v12, %v3981_v1  ;;  %v1617_v2 = vadd.f32 %v1610_v41, %v3984_v11 }
 0x51e   :  { %v1541_v26 = vpop.f32.mrf.mxu0  ;;  %v1612_v0 = vpop.f32.mrf.mxu1 }
 0x51f   :  { %v2457_v61 = vmul.f32 -1.442695, %v1615_v3  ;;  %v1616_v8 = vadd.f32 %v1541_v26, %v3982_v14  ;;  %v1618_v44 = vadd.f32 %v1612_v0, %v3983_v7 }
 0x521   :  { %2546 = vpow2.f32 %v2457_v61  ;;  %v2458_v59 = vmul.f32 -1.442695, %v1616_v8  ;;  %v2459_v15 = vmul.f32 -1.442695, %v1618_v44  ;;  %v2201_v44 = vld [vmem:[#allocation9 + $0x1f8] sm:$0xff] }
 0x523   :  { %2548 = vpow2.f32 %v2458_v59 }
 0x524   :  { %2550 = vtanh.f32 %v1617_v2  ;;  %v2199_v2 = vld [vmem:[#allocation9 + $0x1e8] sm:$0xff] }
 0x525   :  { %2552 = vpow2.f32 %v2459_v15 }
 0x52e   :  { %v2547_v62 = vpop.eup %2546 }
 0x52f   :  { %v1622_v63 = vadd.f32 1.0, %v2547_v62  ;;  %v2198_v62 = vld [vmem:[#allocation9 + $0x1e0] sm:$0xff] }
 0x530   :  { %v2549_v4 = vpop.eup %2548 }
 0x531   :  { %2554 = vrcp.f32 %v1622_v63  ;;  %v1628_v12 = vadd.f32 1.0, %v2549_v4  ;;  %v2551_v3 = vpop.eup %2550  ;;  %v2200_v4 = vld [vmem:[#allocation9 + $0x1f0] sm:$0xff] }
 0x532   :  { %v2553_v1 = vpop.eup %2552 }
 0x533   :  { %2556 = vrcp.f32 %v1628_v12  ;;  %v1635_v14 = vadd.f32 1.0, %v2553_v1  ;;  %v2195_v12 = vld [vmem:[#allocation9 + $0x1c8] sm:$0xff]  ;;  %v2194_v1 = vld [vmem:[#allocation9 + $0x1c0] sm:$0xff] }
 0x535   :  { %2558 = vrcp.f32 %v1635_v14  ;;  %v2190_v14 = vld [vmem:[#allocation9 + $0x1a0] sm:$0xff] }
 0x53e   :  { %v2555_v61 = vpop.eup %2554 }
 0x53f   :  { %v1639_v26 = vmul.f32 %v2555_v61, %v2551_v3  ;;  %v2197_v3 = vld [vmem:[#allocation9 + $0x1d8] sm:$0xff]  ;;  %v2196_v61 = vld [vmem:[#allocation9 + $0x1d0] sm:$0xff] }
 0x540   :  { %v2557_v8 = vpop.eup %2556 }
 0x541   :  { %v1638_v59 = vmul.f32 %v2557_v8, %v3591_v60  ;;  %v2193_v8 = vld [vmem:[#allocation9 + $0x1b8] sm:$0xff] }
 0x542   :  { %v2559_v11 = vpop.eup %2558 }
 0x543   :  { %v3665_v7 = vadd.f32 %v1639_v26, %v1638_v59  ;;  %v2191_v26 = vld [vmem:[#allocation9 + $0x1a8] sm:$0xff]  ;;  %v2192_v59 = vld [vmem:[#allocation9 + $0x1b0] sm:$0xff] }
 0x545   :  { %2560 = vtanh.f32 %v3665_v7 }
 0x552   :  { %v2561_v0 = vpop.eup %2560 }
 0x553   :  { %v1642_v41 = vmul.f32 %v2561_v0, %v2559_v11  ;;  %v2189_v11 = vld [vmem:[#allocation9 + $0x198] sm:$0xff]  ;;  %v2186_v0 = vld [vmem:[#allocation9 + $0x180] sm:$0xff] }
 0x555   :  { %1644 = vst [vmem:[#allocation12 + $0x20] sm:$0xff] %v1642_v41  ;;  %1781 = vmatmul.mubr.f32.vlgmr.msra.gmra.mxu0 %v1642_v41  ;;  %1852 = vmatmul.mubr.f32.vlgmr.msra.gmra.mxu1 %v1642_v41  ;;  %v2188_v41 = vld [vmem:[#allocation9 + $0x190] sm:$0xff] }
 0x556   :  { %1960 = vmatpush1.msra.mxu0 %v3324_v10  ;;  %2031 = vmatpush1.msra.mxu1 %v3326_v17  ;;  %v3985_v10 = vld [vmem:[#allocation23_spill] sm:$0xff]  ;;  %v3986_v17 = vld [vmem:[#allocation24_spill] sm:$0xff] }
 0x557   :  { %1961 = vmatprep.subr.mxu0 %v3330_v35  ;;  %2032 = vmatprep.subr.mxu1 %v3332_v5  ;;  %v3987_v35 = vld [vmem:[#allocation25_spill] sm:$0xff]  ;;  %v3988_v5 = vld [vmem:[#allocation26_spill] sm:$0xff] }
 0x558   :  { %1962 = vmatpush1.msra.mxu0 %v3336_v16  ;;  %2033 = vmatpush1.msra.mxu1 %v3338_v13  ;;  %v3989_v16 = vld [vmem:[#allocation27_spill] sm:$0xff]  ;;  %v3990_v13 = vld [vmem:[#allocation28_spill] sm:$0xff] }
 0x559   :  { %1963 = vmatprep.subr.mxu0 %v3342_v6  ;;  %2034 = vmatprep.subr.mxu1 %v3344_v53  ;;  %v3991_v6 = vld [vmem:[#allocation29_spill] sm:$0xff]  ;;  %v3992_v53 = vld [vmem:[#allocation30_spill] sm:$0xff] }
 0x55a   :  { %1964 = vmatpush1.msra.mxu0 %v3348_v18  ;;  %2035 = vmatpush1.msra.mxu1 %v3350_v9  ;;  %v3993_v18 = vld [vmem:[#allocation31_spill] sm:$0xff]  ;;  %v3994_v9 = vld [vmem:[#allocation32_spill] sm:$0xff] }
 0x55b   :  { %1965 = vmatprep.subr.mxu0 %v3354_v19  ;;  %2036 = vmatprep.subr.mxu1 %v3356_v20  ;;  %v3995_v19 = vld [vmem:[#allocation33_spill] sm:$0xff]  ;;  %v3996_v20 = vld [vmem:[#allocation34_spill] sm:$0xff] }
 0x55c   :  { %1966 = vmatpush1.msra.mxu0 %v3360_v21  ;;  %2037 = vmatpush1.msra.mxu1 %v3362_v22  ;;  %v3997_v21 = vld [vmem:[#allocation35_spill] sm:$0xff]  ;;  %v3998_v22 = vld [vmem:[#allocation36_spill] sm:$0xff] }
 0x55d   :  { %1967 = vmatprep.subr.mxu0 %v3366_v23  ;;  %2038 = vmatprep.subr.mxu1 %v3368_v24  ;;  %v3999_v23 = vld [vmem:[#allocation37_spill] sm:$0xff]  ;;  %v4000_v24 = vld [vmem:[#allocation38_spill] sm:$0xff] }
 0x55e   :  { %1968 = vmatpush1.msra.mxu0 %v3372_v25  ;;  %2039 = vmatpush1.msra.mxu1 %v3374_v27  ;;  %v4001_v25 = vmov 0.0   ;;  %v4002_v27 = vld [vmem:[#allocation39_spill] sm:$0xff] }
 0x55f   :  { %1969 = vmatprep.subr.mxu0 %v3378_v28  ;;  %2040 = vmatprep.subr.mxu1 %v3380_v29  ;;  %v4003_v29 = vld [vmem:[#allocation57_spill] sm:$0xff] }
 0x560   :  { %1970 = vmatpush1.msra.mxu0 %v3384_v30  ;;  %2041 = vmatpush1.msra.mxu1 %v3386_v31 }
 0x561   :  { %1971 = vmatprep.subr.mxu0 %v3390_v32  ;;  %2042 = vmatprep.subr.mxu1 %v3392_v33  ;;  %v4004_v33 = vld [vmem:[#allocation59_spill] sm:$0xff] }
 0x562   :  { %1972 = vmatpush1.msra.mxu0 %v3396_v34  ;;  %2043 = vmatpush1.msra.mxu1 %v3398_v36 }
 0x563   :  { %1973 = vmatprep.subr.mxu0 %v3402_v37  ;;  %2044 = vmatprep.subr.mxu1 %v3404_v38 }
 0x564   :  { %1974 = vmatpush1.msra.mxu0 %v3406_v39  ;;  %2045 = vmatpush1.msra.mxu1 %v3410_v40  ;;  %v4005_v39 = vld [vmem:[#allocation60_spill] sm:$0xff] }
 0x565   :  { %1975 = vmatprep.subr.mxu0 %v3412_v42  ;;  %2046 = vmatprep.subr.mxu1 %v3414_v43  ;;  %v4006_v42 = vld [vmem:[#allocation58_spill] sm:$0xff] }
 0x566   :  { %1976 = vmatpush1.msra.mxu0 %v3418_v45  ;;  %2047 = vmatpush1.msra.mxu1 %v3420_v46 }
 0x567   :  { %1977 = vmatprep.subr.mxu0 %v3422_v47  ;;  %2048 = vmatprep.subr.mxu1 %v3426_v48 }
 0x568   :  { %1978 = vmatpush1.msra.mxu0 %v3428_v49  ;;  %2049 = vmatpush1.msra.mxu1 %v3430_v50 }
 0x569   :  { %1979 = vmatprep.subr.mxu0 %v3434_v51  ;;  %2050 = vmatprep.subr.mxu1 %v3436_v52 }
 0x56a   :  { %1980 = vmatpush1.msra.mxu0 %v3440_v54  ;;  %2051 = vmatpush1.msra.mxu1 %v3442_v55 }
 0x56b   :  { %1981 = vmatprep.subr.mxu0 %v3446_v56  ;;  %2052 = vmatprep.subr.mxu1 %v3448_v57 }
 0x56c   :  { %1982 = vmatpush1.msra.mxu0 %v3452_v58  ;;  %2053 = vmatpush1.msra.mxu1 %v3985_v10  ;;  %v2183_v10 = vld [vmem:[#allocation9 + $0x168] sm:$0xff] }
 0x56d   :  { %1983 = vmatprep.subr.mxu0 %v3986_v17  ;;  %2054 = vmatprep.subr.mxu1 %v3987_v35  ;;  %v2185_v17 = vld [vmem:[#allocation9 + $0x178] sm:$0xff]  ;;  %v2182_v35 = vld [vmem:[#allocation9 + $0x160] sm:$0xff] }
 0x56e   :  { %1984 = vmatpush1.msra.mxu0 %v3988_v5  ;;  %2055 = vmatpush1.msra.mxu1 %v3989_v16  ;;  %v2184_v5 = vld [vmem:[#allocation9 + $0x170] sm:$0xff]  ;;  %v2179_v16 = vld [vmem:[#allocation9 + $0x148] sm:$0xff] }
 0x56f   :  { %1985 = vmatprep.subr.mxu0 %v3990_v13  ;;  %2056 = vmatprep.subr.mxu1 %v3991_v6  ;;  %v2181_v13 = vld [vmem:[#allocation9 + $0x158] sm:$0xff]  ;;  %v2178_v6 = vld [vmem:[#allocation9 + $0x140] sm:$0xff] }
 0x570   :  { %1986 = vmatpush1.msra.mxu0 %v3992_v53  ;;  %2057 = vmatpush1.msra.mxu1 %v3993_v18  ;;  %v2180_v53 = vld [vmem:[#allocation9 + $0x150] sm:$0xff]  ;;  %v2175_v18 = vld [vmem:[#allocation9 + $0x128] sm:$0xff] }
 0x571   :  { %1987 = vmatprep.subr.mxu0 %v3994_v9  ;;  %2058 = vmatprep.subr.mxu1 %v3995_v19  ;;  %v2177_v9 = vld [vmem:[#allocation9 + $0x138] sm:$0xff]  ;;  %v2174_v19 = vld [vmem:[#allocation9 + $0x120] sm:$0xff] }
 0x572   :  { %1988 = vmatpush1.msra.mxu0 %v3996_v20  ;;  %2059 = vmatpush1.msra.mxu1 %v3997_v21  ;;  %v2176_v20 = vld [vmem:[#allocation9 + $0x130] sm:$0xff]  ;;  %v2171_v21 = vld [vmem:[#allocation9 + $0x108] sm:$0xff] }
 0x573   :  { %1989 = vmatprep.subr.mxu0 %v3998_v22  ;;  %2060 = vmatprep.subr.mxu1 %v3999_v23  ;;  %v2173_v22 = vld [vmem:[#allocation9 + $0x118] sm:$0xff]  ;;  %v2170_v23 = vld [vmem:[#allocation9 + $0x100] sm:$0xff] }
 0x574   :  { %1990 = vmatpush1.msra.mxu0 %v4000_v24  ;;  %2023 = vmatprep.mubr.f32.mxu0 %v4001_v25  ;;  %v2172_v24 = vld [vmem:[#allocation9 + $0x110] sm:$0xff] }
 0x575   :  { %2061 = vmatpush1.msra.mxu1 %v4002_v27  ;;  %2094 = vmatprep.mubr.f32.mxu1 %v4001_v25  ;;  %v2169_v27 = vld [vmem:[#allocation9 + $0xf8] sm:$0xff] }
 0x576   :  { %2202 = vmatprep.subr.mxu0 %v2199_v2  ;;  %2273 = vmatprep.subr.mxu1 %v2201_v44  ;;  %v2140_v2 = vld [vmem:[#allocation9 + $0x10] sm:$0xff] }
 0x615   :  { %v1782_v28 = vpop.f32.mrf.mxu0  ;;  %v1853_v36 = vpop.f32.mrf.mxu1 }
 0x616   :  { %v1858_v30 = vadd.f32 %v1782_v28, %v4003_v29  ;;  %v1860_v43 = vadd.f32 %v1853_v36, %v4006_v42  ;;  %v2166_v28 = vld [vmem:[#allocation9 + $0xe0] sm:$0xff]  ;;  %v2168_v29 = vld [vmem:[#allocation9 + $0xf0] sm:$0xff]  ;;  %v2161_v36 = vld [vmem:[#allocation9 + $0xb8] sm:$0xff] }
 0x617   :  { %v1784_v31 = vpop.f32.mrf.mxu0  ;;  %v1855_v38 = vpop.f32.mrf.mxu1  ;;  %v2154_v42 = vld [vmem:[#allocation9 + $0x80] sm:$0xff] }
 0x618   :  { %v2460_v32 = vmul.f32 -1.442695, %v1858_v30  ;;  %v1859_v34 = vadd.f32 %v1784_v31, %v4004_v33  ;;  %v1861_v40 = vadd.f32 %v1855_v38, %v4005_v39  ;;  %v2163_v30 = vld [vmem:[#allocation9 + $0xc8] sm:$0xff]  ;;  %v2165_v31 = vld [vmem:[#allocation9 + $0xd8] sm:$0xff]  ;;  %v2164_v33 = vld [vmem:[#allocation9 + $0xd0] sm:$0xff] }
 0x619   :  { %v2160_v38 = vld [vmem:[#allocation9 + $0xb0] sm:$0xff]  ;;  %v2155_v39 = vld [vmem:[#allocation9 + $0x88] sm:$0xff] }
 0x61a   :  { %2562 = vpow2.f32 %v2460_v32  ;;  %v2461_v37 = vmul.f32 -1.442695, %v1859_v34  ;;  %v2462_v45 = vmul.f32 -1.442695, %v1861_v40  ;;  %v2162_v32 = vld [vmem:[#allocation9 + $0xc0] sm:$0xff]  ;;  %v2159_v34 = vld [vmem:[#allocation9 + $0xa8] sm:$0xff] }
 0x61b   :  { %v2157_v40 = vld [vmem:[#allocation9 + $0x98] sm:$0xff] }
 0x61c   :  { %2564 = vpow2.f32 %v2461_v37  ;;  %v2158_v37 = vld [vmem:[#allocation9 + $0xa0] sm:$0xff] }
 0x61d   :  { %2566 = vtanh.f32 %v1860_v43  ;;  %v2156_v43 = vld [vmem:[#allocation9 + $0x90] sm:$0xff] }
 0x61e   :  { %2568 = vpow2.f32 %v2462_v45  ;;  %v2151_v45 = vld [vmem:[#allocation9 + $0x68] sm:$0xff] }
 0x627   :  { %v2563_v46 = vpop.eup %2562 }
 0x628   :  { %v1865_v47 = vadd.f32 1.0, %v2563_v46  ;;  %v2153_v46 = vld [vmem:[#allocation9 + $0x78] sm:$0xff] }
 0x629   :  { %v2565_v48 = vpop.eup %2564 }
 0x62a   :  { %2570 = vrcp.f32 %v1865_v47  ;;  %v1871_v49 = vadd.f32 1.0, %v2565_v48  ;;  %v2567_v50 = vpop.eup %2566  ;;  %v2150_v47 = vld [vmem:[#allocation9 + $0x60] sm:$0xff]  ;;  %v2152_v48 = vld [vmem:[#allocation9 + $0x70] sm:$0xff] }
 0x62b   :  { %v2569_v51 = vpop.eup %2568 }
 0x62c   :  { %2572 = vrcp.f32 %v1871_v49  ;;  %v1878_v56 = vadd.f32 1.0, %v2569_v51  ;;  %v2147_v49 = vld [vmem:[#allocation9 + $0x48] sm:$0xff]  ;;  %v2146_v51 = vld [vmem:[#allocation9 + $0x40] sm:$0xff] }
 0x62e   :  { %2574 = vrcp.f32 %v1878_v56  ;;  %v2142_v56 = vld [vmem:[#allocation9 + $0x20] sm:$0xff] }
 0x637   :  { %v2571_v52 = vpop.eup %2570 }
 0x638   :  { %v1882_v54 = vmul.f32 %v2571_v52, %v2567_v50  ;;  %v2149_v50 = vld [vmem:[#allocation9 + $0x58] sm:$0xff]  ;;  %v2148_v52 = vld [vmem:[#allocation9 + $0x50] sm:$0xff] }
 0x639   :  { %v2573_v55 = vpop.eup %2572 }
 0x63a   :  { %v1881_v57 = vmul.f32 %v2573_v55, %v3665_v7  ;;  %v2187_v7 = vld [vmem:[#allocation9 + $0x188] sm:$0xff]  ;;  %v2145_v55 = vld [vmem:[#allocation9 + $0x38] sm:$0xff] }
 0x63b   :  { %v2575_v60 = vpop.eup %2574 }
 0x63c   :  { %v3737_v58 = vadd.f32 %v1882_v54, %v1881_v57  ;;  %v2143_v54 = vld [vmem:[#allocation9 + $0x28] sm:$0xff]  ;;  %v2144_v57 = vld [vmem:[#allocation9 + $0x30] sm:$0xff] }
 0x63e   :  { %2576 = vtanh.f32 %v3737_v58 }
 0x64b   :  { %v2577_v63 = vpop.eup %2576 }
 0x64c   :  { %v1885_v15 = vmul.f32 %v2577_v63, %v2575_v60  ;;  %v2139_v60 = vld [vmem:[#allocation9 + $0x8] sm:$0xff]  ;;  %v2141_v63 = vld [vmem:[#allocation9 + $0x18] sm:$0xff] }
 0x64e   :  { %1887 = vst [vmem:[#allocation12 + $0x28] sm:$0xff] %v1885_v15  ;;  %2024 = vmatmul.mubr.f32.vlgmr.msra.gmra.mxu0 %v1885_v15  ;;  %2095 = vmatmul.mubr.f32.vlgmr.msra.gmra.mxu1 %v1885_v15  ;;  %v2138_v15 = vld [vmem:[#allocation9] sm:$0xff] }
 0x64f   :  { %2266 = vmatprep.mubr.f32.mxu0 %v4001_v25  ;;  %2337 = vmatprep.mubr.f32.mxu1 %v4001_v25  ;;  %v2167_v25 = vld [vmem:[#allocation9 + $0xe8] sm:$0xff] }
 0x650   :  { %2203 = vmatpush1.msra.mxu0 %v2198_v62  ;;  %2274 = vmatpush1.msra.mxu1 %v2200_v4  ;;  %v4007_v62 = vld [vmem:[#allocation61_spill] sm:$0xff] }
 0x651   :  { %2204 = vmatprep.subr.mxu0 %v2195_v12  ;;  %2275 = vmatprep.subr.mxu1 %v2197_v3 }
 0x652   :  { %2205 = vmatpush1.msra.mxu0 %v2194_v1  ;;  %2276 = vmatpush1.msra.mxu1 %v2196_v61  ;;  %v4008_v1 = vld [vmem:[#allocation63_spill] sm:$0xff] }
 0x653   :  { %2206 = vmatprep.subr.mxu0 %v2191_v26  ;;  %2277 = vmatprep.subr.mxu1 %v2193_v8 }
 0x654   :  { %2207 = vmatpush1.msra.mxu0 %v2190_v14  ;;  %2278 = vmatpush1.msra.mxu1 %v2192_v59  ;;  %v4009_v59 = vld [vmem:[#allocation64_spill] sm:$0xff] }
 0x655   :  { %2208 = vmatprep.subr.mxu0 %v2187_v7  ;;  %2279 = vmatprep.subr.mxu1 %v2189_v11  ;;  %v4010_v11 = vld [vmem:[#allocation62_spill] sm:$0xff] }
 0x656   :  { %2209 = vmatpush1.msra.mxu0 %v2186_v0  ;;  %2280 = vmatpush1.msra.mxu1 %v2188_v41 }
 0x657   :  { %2210 = vmatprep.subr.mxu0 %v2183_v10  ;;  %2281 = vmatprep.subr.mxu1 %v2185_v17 }
 0x658   :  { %2211 = vmatpush1.msra.mxu0 %v2182_v35  ;;  %2282 = vmatpush1.msra.mxu1 %v2184_v5 }
 0x659   :  { %2212 = vmatprep.subr.mxu0 %v2179_v16  ;;  %2283 = vmatprep.subr.mxu1 %v2181_v13 }
 0x65a   :  { %2213 = vmatpush1.msra.mxu0 %v2178_v6  ;;  %2284 = vmatpush1.msra.mxu1 %v2180_v53 }
 0x65b   :  { %2214 = vmatprep.subr.mxu0 %v2175_v18  ;;  %2285 = vmatprep.subr.mxu1 %v2177_v9 }
 0x65c   :  { %2215 = vmatpush1.msra.mxu0 %v2174_v19  ;;  %2286 = vmatpush1.msra.mxu1 %v2176_v20 }
 0x65d   :  { %2216 = vmatprep.subr.mxu0 %v2171_v21  ;;  %2287 = vmatprep.subr.mxu1 %v2173_v22 }
 0x65e   :  { %2217 = vmatpush1.msra.mxu0 %v2170_v23  ;;  %2288 = vmatpush1.msra.mxu1 %v2172_v24 }
 0x65f   :  { %2218 = vmatprep.subr.mxu0 %v2167_v25  ;;  %2289 = vmatprep.subr.mxu1 %v2169_v27  ;;  %v4011_v25 = vld [vmem:[#allocation65_spill] sm:$0xff] }
 0x660   :  { %2219 = vmatpush1.msra.mxu0 %v2166_v28  ;;  %2290 = vmatpush1.msra.mxu1 %v2168_v29 }
 0x661   :  { %2220 = vmatprep.subr.mxu0 %v2163_v30  ;;  %2291 = vmatprep.subr.mxu1 %v2165_v31  ;;  %v4012_v30 = vld [vmem:[#allocation67_spill] sm:$0xff] }
 0x662   :  { %2221 = vmatpush1.msra.mxu0 %v2162_v32  ;;  %2292 = vmatpush1.msra.mxu1 %v2164_v33 }
 0x663   :  { %2222 = vmatprep.subr.mxu0 %v2159_v34  ;;  %2293 = vmatprep.subr.mxu1 %v2161_v36  ;;  %v4013_v34 = vld [vmem:[#allocation68_spill] sm:$0xff] }
 0x664   :  { %2223 = vmatpush1.msra.mxu0 %v2158_v37  ;;  %2294 = vmatpush1.msra.mxu1 %v2160_v38  ;;  %v4014_v37 = vld [vmem:[#allocation66_spill] sm:$0xff] }
 0x665   :  { %2224 = vmatprep.subr.mxu0 %v2155_v39  ;;  %2295 = vmatprep.subr.mxu1 %v2157_v40 }
 0x666   :  { %2225 = vmatpush1.msra.mxu0 %v2154_v42  ;;  %2296 = vmatpush1.msra.mxu1 %v2156_v43 }
 0x667   :  { %2226 = vmatprep.subr.mxu0 %v2151_v45  ;;  %2297 = vmatprep.subr.mxu1 %v2153_v46 }
 0x668   :  { %2227 = vmatpush1.msra.mxu0 %v2150_v47  ;;  %2298 = vmatpush1.msra.mxu1 %v2152_v48 }
 0x669   :  { %2228 = vmatprep.subr.mxu0 %v2147_v49  ;;  %2299 = vmatprep.subr.mxu1 %v2149_v50 }
 0x66a   :  { %2229 = vmatpush1.msra.mxu0 %v2146_v51  ;;  %2300 = vmatpush1.msra.mxu1 %v2148_v52 }
 0x66b   :  { %2230 = vmatprep.subr.mxu0 %v2143_v54  ;;  %2301 = vmatprep.subr.mxu1 %v2145_v55 }
 0x66c   :  { %2231 = vmatpush1.msra.mxu0 %v2142_v56  ;;  %2302 = vmatpush1.msra.mxu1 %v2144_v57 }
 0x66d   :  { %2232 = vmatprep.subr.mxu0 %v2139_v60  ;;  %2303 = vmatprep.subr.mxu1 %v2141_v63 }
 0x66e   :  { %2233 = vmatpush1.msra.mxu0 %v2138_v15  ;;  %2304 = vmatpush1.msra.mxu1 %v2140_v2 }
 0x70e   :  { %v2025_v44 = vpop.f32.mrf.mxu0  ;;  %v2096_v26 = vpop.f32.mrf.mxu1 }
 0x70f   :  { %v2101_v4 = vadd.f32 %v2025_v44, %v4007_v62  ;;  %v2103_v0 = vadd.f32 %v2096_v26, %v4010_v11 }
 0x710   :  { %v2027_v12 = vpop.f32.mrf.mxu0  ;;  %v2098_v14 = vpop.f32.mrf.mxu1 }
 0x711   :  { %v2463_v3 = vmul.f32 -1.442695, %v2101_v4  ;;  %v2102_v61 = vadd.f32 %v2027_v12, %v4008_v1  ;;  %v2104_v7 = vadd.f32 %v2098_v14, %v4009_v59 }
 0x713   :  { %2578 = vpow2.f32 %v2463_v3  ;;  %v2464_v8 = vmul.f32 -1.442695, %v2102_v61  ;;  %v2465_v41 = vmul.f32 -1.442695, %v2104_v7 }
 0x715   :  { %2580 = vpow2.f32 %v2464_v8 }
 0x716   :  { %2582 = vtanh.f32 %v2103_v0 }
 0x717   :  { %2584 = vpow2.f32 %v2465_v41 }
 0x720   :  { %v2579_v10 = vpop.eup %2578 }
 0x721   :  { %v2108_v17 = vadd.f32 1.0, %v2579_v10 }
 0x722   :  { %v2581_v35 = vpop.eup %2580 }
 0x723   :  { %2586 = vrcp.f32 %v2108_v17  ;;  %v2114_v5 = vadd.f32 1.0, %v2581_v35  ;;  %v2583_v16 = vpop.eup %2582 }
 0x724   :  { %v2585_v13 = vpop.eup %2584 }
 0x725   :  { %2588 = vrcp.f32 %v2114_v5  ;;  %v2121_v9 = vadd.f32 1.0, %v2585_v13 }
 0x727   :  { %2590 = vrcp.f32 %v2121_v9 }
 0x730   :  { %v2587_v6 = vpop.eup %2586 }
 0x731   :  { %v2125_v53 = vmul.f32 %v2587_v6, %v2583_v16 }
 0x732   :  { %v2589_v18 = vpop.eup %2588 }
 0x733   :  { %v2124_v19 = vmul.f32 %v2589_v18, %v3737_v58 }
 0x734   :  { %v2591_v21 = vpop.eup %2590 }
 0x735   :  { %v2126_v20 = vadd.f32 %v2125_v53, %v2124_v19 }
 0x737   :  { %2592 = vtanh.f32 %v2126_v20 }
 0x744   :  { %v2593_v22 = vpop.eup %2592 }
 0x745   :  { %v2128_v23 = vmul.f32 %v2593_v22, %v2591_v21 }
 0x747   :  { %2130 = vst [vmem:[#allocation12 + $0x30] sm:$0xff] %v2128_v23  ;;  %2267 = vmatmul.mubr.f32.vlgmr.msra.gmra.mxu0 %v2128_v23  ;;  %2338 = vmatmul.mubr.f32.vlgmr.msra.gmra.mxu1 %v2128_v23 }
 0x807   :  { %v2268_v24 = vpop.f32.mrf.mxu0  ;;  %v2339_v32 = vpop.f32.mrf.mxu1 }
 0x808   :  { %v2344_v27 = vadd.f32 %v2268_v24, %v4011_v25  ;;  %v2346_v38 = vadd.f32 %v2339_v32, %v4014_v37 }
 0x809   :  { %v2270_v28 = vpop.f32.mrf.mxu0  ;;  %v2341_v58 = vpop.f32.mrf.mxu1 }
 0x80a   :  { %v2466_v29 = vmul.f32 -1.442695, %v2344_v27  ;;  %v2345_v31 = vadd.f32 %v2270_v28, %v4012_v30  ;;  %v2347_v36 = vadd.f32 %v2341_v58, %v4013_v34 }
 0x80c   :  { %2594 = vpow2.f32 %v2466_v29  ;;  %v2467_v33 = vmul.f32 -1.442695, %v2345_v31  ;;  %v2468_v39 = vmul.f32 -1.442695, %v2347_v36 }
 0x80e   :  { %2596 = vpow2.f32 %v2467_v33 }
 0x80f   :  { %2598 = vtanh.f32 %v2346_v38 }
 0x810   :  { %2600 = vpow2.f32 %v2468_v39 }
 0x819   :  { %v2595_v40 = vpop.eup %2594 }
 0x81a   :  { %v2351_v42 = vadd.f32 1.0, %v2595_v40 }
 0x81b   :  { %v2597_v43 = vpop.eup %2596 }
 0x81c   :  { %2602 = vrcp.f32 %v2351_v42  ;;  %v2357_v45 = vadd.f32 1.0, %v2597_v43  ;;  %v2599_v46 = vpop.eup %2598 }
 0x81d   :  { %v2601_v47 = vpop.eup %2600 }
 0x81e   :  { %2604 = vrcp.f32 %v2357_v45  ;;  %v2364_v51 = vadd.f32 1.0, %v2601_v47 }
 0x820   :  { %2606 = vrcp.f32 %v2364_v51 }
 0x829   :  { %v2603_v48 = vpop.eup %2602 }
 0x82a   :  { %v2368_v49 = vmul.f32 %v2603_v48, %v2599_v46 }
 0x82b   :  { %v2605_v50 = vpop.eup %2604 }
 0x82c   :  { %v2367_v52 = vmul.f32 %v2605_v50, %v2126_v20 }
 0x82d   :  { %v2607_v55 = vpop.eup %2606 }
 0x82e   :  { %v2369_v54 = vadd.f32 %v2368_v49, %v2367_v52 }
 0x830   :  { %2608 = vtanh.f32 %v2369_v54  ;;  %2375 = vst [vmem:[#allocation15] sm:$0xff] %v2369_v54 }
 0x83d   :  { %v2609_v56 = vpop.eup %2608 }
 0x83e   :  { %v2371_v57 = vmul.f32 %v2609_v56, %v2607_v55 }
 0x840   :  { %2373 = vst [vmem:[#allocation12 + $0x38] sm:$0xff] %v2371_v57  ;;  %2374 = vst [vmem:[#allocation13] sm:$0xff] %v2371_v57 }
 0x841   :  { %2721 = shalt.err (!%p2718_p1)
}
 0x842   :  { %2397 = dma.vmem_to_hbm [thread:$0]  %s2395_s9, 128, %s3770_s7, [#allocation14]  }
 0x843   :  { %s2730_s17 = scalar_lea.vmem %s2382_s11, 1024  ;;  %p2735_p3 = scmp.lt.s32.totalorder %s2382_s11, %s2382_s11 }
 0x844   :  { %p2731_p2 = scmp.ne.s32.totalorder %s2382_s11, %s2730_s17  ;;  %p2736_p4 = scmp.lt.s32.totalorder %s2730_s17, %s2730_s17 }
 0x846   :  { %p2737_p5 = por %p2736_p4, %p2735_p3 }
 0x848   :  { %p2738_p6 = pnand %p2737_p5, %p2731_p2 }
 0x84a   :  { %2741 = shalt.err (!%p2738_p6)
}
 0x84b   :  { %2387 = dma.vmem_to_hbm [thread:$0]  %s2382_s11, 1024, %s3769_s6, [#allocation5], %s2785_s1, %s2785_s1, %s2786_s20  }
 0x84c   :  { %s2750_s21 = scalar_lea.vmem %s2405_s13, 128  ;;  %p2755_p8 = scmp.lt.s32.totalorder %s2405_s13, %s2405_s13 }
 0x84d   :  { %p2751_p7 = scmp.ne.s32.totalorder %s2405_s13, %s2750_s21  ;;  %p2756_p9 = scmp.lt.s32.totalorder %s2750_s21, %s2750_s21 }
 0x84f   :  { %p2757_p10 = por %p2756_p9, %p2755_p8 }
 0x851   :  { %p2758_p11 = pnand %p2757_p10, %p2751_p7 }
 0x853   :  { %2761 = shalt.err (!%p2758_p11)
}
 0x854   :  { %2407 = dma.vmem_to_hbm [thread:$0]  %s2405_s13, 128, %s3771_s8, [#allocation14]  }
 0x855   :  { %2776 = dma.done.wait [#allocation5], 1024  }
 0x856   :  { %2777 = vsyncadd [#allocation5], 4294966272 }
 0x857   :  { %2778 = dma.done.wait [#allocation14], 256  }
 0x858   :  { %2779 = vsyncadd [#allocation14], 4294967040 }
 0x859   :  { %2417 = vsyncpa [#allocation4], 1 }
 0x85a   :  { %2418 = vsyncpa [#allocation7], 1 }
 0x85b   :  { %2419 = vsyncpa [#allocation10], 1 }
 0x85c   :  { %2420 = vsyncpa [#allocation5], 1 }
 0x85d   :  { %2421 = vsyncpa [#allocation14], 1 }

</bundles_post_ra>
